<compile_context>
chip_gen: v5e
topology: v5e:2x2
jax: 0.10.0
libtpu: 0.0.40
codegen_flags: <defaults>
</compile_context>

<pallas_src>
import math

import jax
import jax.numpy as jnp
from jax.experimental import pallas as pl
from jax.experimental.pallas import tpu as pltpu

H1 = 512          # first hidden width
H2 = 256          # second hidden width
OUT_PAD = 128     # lane-dense padded width for the final (., 1) layer
TILE_B = 256      # batch rows per grid step for large batches
LANE = 128
SUBLANE = 8


def _round_up(x, m):
    return (x + m - 1) // m * m


def _leaky_relu(x, slope=0.2):
    return jnp.where(x > 0, x, slope * x)


def discriminator_kernel(x_ref, w1_ref, b1_ref, w2_ref, b2_ref, w3_ref, b3_ref,
                         o_ref):
    """One (TILE_B, D_pad) batch tile through the 3-layer MLP."""
    x = x_ref[...]  # (tile_b, d_pad) f32

    # Linear 1 + LeakyReLU(0.2): bf16 MXU feed, f32 accumulate & elementwise.
    h1 = jnp.dot(x.astype(jnp.bfloat16), w1_ref[...],
                 preferred_element_type=jnp.float32) + b1_ref[...]
    h1 = _leaky_relu(h1)

    # Linear 2 + LeakyReLU(0.2)
    h2 = jnp.dot(h1.astype(jnp.bfloat16), w2_ref[...],
                 preferred_element_type=jnp.float32) + b2_ref[...]
    h2 = _leaky_relu(h2)

    # Linear 3 (zero-padded to 128 output lanes) + Sigmoid
    z = jnp.dot(h2.astype(jnp.bfloat16), w3_ref[...],
                preferred_element_type=jnp.float32) + b3_ref[...]
    o_ref[...] = jax.nn.sigmoid(z).astype(o_ref.dtype)


def make_discriminator_params(image_shape, key):
    """Parameters matching torch's nn.Linear default init scale.

    Weights are kept as (in, out) so the kernel computes x @ W + b, stored in
    bf16 (MXU feed); biases stay f32. W1 rows are zero-padded to a multiple
    of 128 lanes; W3/b3 columns are zero-padded from 1 to 128 lanes.
    """
    d_in = int(math.prod(image_shape))
    d_pad = _round_up(d_in, LANE)
    dims = [(d_in, H1), (H1, H2), (H2, 1)]

    keys = jax.random.split(key, 2 * len(dims))
    raw = []
    for i, (fan_in, fan_out) in enumerate(dims):
        bound = 1.0 / math.sqrt(fan_in)
        w = jax.random.uniform(keys[2 * i], (fan_in, fan_out),
                               minval=-bound, maxval=bound, dtype=jnp.float32)
        b = jax.random.uniform(keys[2 * i + 1], (1, fan_out),
                               minval=-bound, maxval=bound, dtype=jnp.float32)
        raw.append((w, b))

    (w1, b1), (w2, b2), (w3, b3) = raw
    # Pad K of layer 1 (zeros -> no contribution from padded x columns).
    w1 = jnp.pad(w1, ((0, d_pad - d_in), (0, 0))).astype(jnp.bfloat16)
    w2 = w2.astype(jnp.bfloat16)
    # Pad N of layer 3 to a full 128-lane output slab.
    w3 = jnp.pad(w3, ((0, 0), (0, OUT_PAD - 1))).astype(jnp.bfloat16)
    b3 = jnp.pad(b3, ((0, 0), (0, OUT_PAD - 1)))
    return [(w1, b1), (w2, b2), (w3, b3)]


def discriminator_forward(image, params):
    """image: (B, C, H, W) float32 -> validity: (B, 1) float32."""
    (w1, b1), (w2, b2), (w3, b3) = params
    B = image.shape[0]
    d_in = int(math.prod(image.shape[1:]))
    d_pad = w1.shape[0]

    # Flatten (same as torch .view) and pad D to the 128-lane boundary.
    x = image.reshape(B, d_in).astype(jnp.float32)
    if d_pad != d_in:
        x = jnp.pad(x, ((0, 0), (0, d_pad - d_in)))

    # Batch tiling: 256-row tiles for large batches, 8-row-aligned otherwise.
    tile_b = min(TILE_B, _round_up(B, SUBLANE))
    b_pad = _round_up(B, tile_b)
    if b_pad != B:
        x = jnp.pad(x, ((0, b_pad - B), (0, 0)))
    grid = (b_pad // tile_b,)

    # VMEM budget with headroom (weights resident + double-buffered tiles).
    weight_bytes = sum(int(a.size) * a.dtype.itemsize
                       for a in (w1, b1, w2, b2, w3, b3))
    tile_bytes = 2 * tile_b * d_pad * 4 + 2 * tile_b * OUT_PAD * 4
    vmem_limit = int(min(48 * 1024 * 1024,
                         max(2 * (weight_bytes + tile_bytes),
                             16 * 1024 * 1024)))

    cost = pl.CostEstimate(
        flops=2 * b_pad * (d_pad * H1 + H1 * H2 + H2 * OUT_PAD),
        transcendentals=b_pad * OUT_PAD,
        bytes_accessed=int(x.size) * 4 + weight_bytes + b_pad * OUT_PAD * 4,
    )

    out = pl.pallas_call(
        discriminator_kernel,
        out_shape=jax.ShapeDtypeStruct((b_pad, OUT_PAD), jnp.float32),
        grid=grid,
        in_specs=[
            pl.BlockSpec((tile_b, d_pad), lambda i: (i, 0)),   # x tile
            pl.BlockSpec((d_pad, H1), lambda i: (0, 0)),       # w1 (resident)
            pl.BlockSpec((1, H1), lambda i: (0, 0)),           # b1
            pl.BlockSpec((H1, H2), lambda i: (0, 0)),          # w2
            pl.BlockSpec((1, H2), lambda i: (0, 0)),           # b2
            pl.BlockSpec((H2, OUT_PAD), lambda i: (0, 0)),     # w3 (padded)
            pl.BlockSpec((1, OUT_PAD), lambda i: (0, 0)),      # b3 (padded)
        ],
        out_specs=pl.BlockSpec((tile_b, OUT_PAD), lambda i: (i, 0)),
        compiler_params=pltpu.CompilerParams(
            dimension_semantics=("parallel",),
            vmem_limit_bytes=vmem_limit,
        ),
        cost_estimate=cost,
    )(x, w1, b1, w2, b2, w3, b3)

    # Drop batch padding and the 127 zero-padded output lanes.
    return out[:B, :1]


if __name__ == "__main__":
    key = jax.random.PRNGKey(0)
    k_img, k_par = jax.random.split(key)

    image_shape = (4, 16, 16)          # C, H, W  -> D = 1024
    batch = 2
    image = jax.random.normal(k_img, (batch,) + image_shape, dtype=jnp.float32)

    params = make_discriminator_params(image_shape, k_par)

    validity = discriminator_forward(image, params)
    validity = jax.block_until_ready(validity)
    assert validity.shape == (batch, 1)

    # Pure-JAX reference mirroring the kernel math (bf16 MXU feed, f32 acc).
    (w1, b1), (w2, b2), (w3, b3) = params
    x = image.reshape(batch, -1).astype(jnp.float32)
    if w1.shape[0] != x.shape[1]:
        x = jnp.pad(x, ((0, 0), (0, w1.shape[0] - x.shape[1])))
    h1 = jnp.dot(x.astype(jnp.bfloat16), w1,
                 preferred_element_type=jnp.float32) + b1
    h1 = jnp.where(h1 > 0, h1, 0.2 * h1)
    h2 = jnp.dot(h1.astype(jnp.bfloat16), w2,
                 preferred_element_type=jnp.float32) + b2
    h2 = jnp.where(h2 > 0, h2, 0.2 * h2)
    z = jnp.dot(h2.astype(jnp.bfloat16), w3,
                preferred_element_type=jnp.float32) + b3
    ref = jax.nn.sigmoid(z)[:, :1]

    assert jnp.allclose(validity, ref, atol=2e-3), "mismatch vs reference"
    print("KERNEL_OK")
</pallas_src>

<mosaic_0001>
module attributes {stable_mosaic.version = 11 : i64} {
  func.func @discriminator_kernel(%arg0: i32, %arg1: memref<8x1024xf32, #tpu.memory_space<vmem>>, %arg2: memref<1024x512xbf16, #tpu.memory_space<vmem>>, %arg3: memref<1x512xf32, #tpu.memory_space<vmem>>, %arg4: memref<512x256xbf16, #tpu.memory_space<vmem>>, %arg5: memref<1x256xf32, #tpu.memory_space<vmem>>, %arg6: memref<256x128xbf16, #tpu.memory_space<vmem>>, %arg7: memref<1x128xf32, #tpu.memory_space<vmem>>, %arg8: memref<8x128xf32, #tpu.memory_space<vmem>>) attributes {dimension_semantics = [#tpu.dimension_semantics<parallel>], iteration_bounds = array<i64: 1>, scalar_prefetch = 0 : i64, scratch_operands = 0 : i64, tpu.core_type = #tpu.core_type<tc>, window_params = [{transform_indices = @transform_0, window_bounds = array<i64: 8, 1024>}, {pipeline_mode = #tpu.pipeline_mode<synchronous>, transform_indices = @transform_1, window_bounds = array<i64: 1024, 512>}, {pipeline_mode = #tpu.pipeline_mode<synchronous>, transform_indices = @transform_2, window_bounds = array<i64: 1, 512>}, {pipeline_mode = #tpu.pipeline_mode<synchronous>, transform_indices = @transform_3, window_bounds = array<i64: 512, 256>}, {pipeline_mode = #tpu.pipeline_mode<synchronous>, transform_indices = @transform_4, window_bounds = array<i64: 1, 256>}, {pipeline_mode = #tpu.pipeline_mode<synchronous>, transform_indices = @transform_5, window_bounds = array<i64: 256, 128>}, {pipeline_mode = #tpu.pipeline_mode<synchronous>, transform_indices = @transform_6, window_bounds = array<i64: 1, 128>}, {transform_indices = @transform_7, window_bounds = array<i64: 8, 128>}]} {
    %c0 = arith.constant 0 : index
    %c0_0 = arith.constant 0 : index
    %0 = vector.load %arg1[%c0, %c0_0] : memref<8x1024xf32, #tpu.memory_space<vmem>>, vector<8x1024xf32>
    %1 = arith.truncf %0 : vector<8x1024xf32> to vector<8x1024xbf16>
    %c0_1 = arith.constant 0 : index
    %c0_2 = arith.constant 0 : index
    %2 = vector.load %arg2[%c0_1, %c0_2] : memref<1024x512xbf16, #tpu.memory_space<vmem>>, vector<1024x512xbf16>
    %cst = arith.constant dense<0.000000e+00> : vector<8x512xf32>
    %3 = tpu.matmul %1, %2, %cst {dimension_numbers = #tpu.dot_dimension_numbers<[1], [0], [0], [1], [0, 0, 1, 1], [], []>} : vector<8x1024xbf16>, vector<1024x512xbf16>, vector<8x512xf32> -> vector<8x512xf32>
    %c0_3 = arith.constant 0 : index
    %c0_4 = arith.constant 0 : index
    %4 = vector.load %arg3[%c0_3, %c0_4] : memref<1x512xf32, #tpu.memory_space<vmem>>, vector<1x512xf32>
    %5 = vector.broadcast %4 : vector<1x512xf32> to vector<8x512xf32>
    %6 = arith.addf %3, %5 : vector<8x512xf32>
    %cst_5 = arith.constant 0.000000e+00 : f32
    %7 = vector.broadcast %cst_5 : f32 to vector<8x512xf32>
    %8 = arith.cmpf ogt, %6, %7 : vector<8x512xf32>
    %cst_6 = arith.constant 2.000000e-01 : f32
    %9 = vector.broadcast %cst_6 : f32 to vector<8x512xf32>
    %10 = arith.mulf %9, %6 : vector<8x512xf32>
    %11 = arith.select %8, %6, %10 : vector<8x512xi1>, vector<8x512xf32>
    %12 = arith.truncf %11 : vector<8x512xf32> to vector<8x512xbf16>
    %c0_7 = arith.constant 0 : index
    %c0_8 = arith.constant 0 : index
    %13 = vector.load %arg4[%c0_7, %c0_8] : memref<512x256xbf16, #tpu.memory_space<vmem>>, vector<512x256xbf16>
    %cst_9 = arith.constant dense<0.000000e+00> : vector<8x256xf32>
    %14 = tpu.matmul %12, %13, %cst_9 {dimension_numbers = #tpu.dot_dimension_numbers<[1], [0], [0], [1], [0, 0, 1, 1], [], []>} : vector<8x512xbf16>, vector<512x256xbf16>, vector<8x256xf32> -> vector<8x256xf32>
    %c0_10 = arith.constant 0 : index
    %c0_11 = arith.constant 0 : index
    %15 = vector.load %arg5[%c0_10, %c0_11] : memref<1x256xf32, #tpu.memory_space<vmem>>, vector<1x256xf32>
    %16 = vector.broadcast %15 : vector<1x256xf32> to vector<8x256xf32>
    %17 = arith.addf %14, %16 : vector<8x256xf32>
    %cst_12 = arith.constant 0.000000e+00 : f32
    %18 = vector.broadcast %cst_12 : f32 to vector<8x256xf32>
    %19 = arith.cmpf ogt, %17, %18 : vector<8x256xf32>
    %cst_13 = arith.constant 2.000000e-01 : f32
    %20 = vector.broadcast %cst_13 : f32 to vector<8x256xf32>
    %21 = arith.mulf %20, %17 : vector<8x256xf32>
    %22 = arith.select %19, %17, %21 : vector<8x256xi1>, vector<8x256xf32>
    %23 = arith.truncf %22 : vector<8x256xf32> to vector<8x256xbf16>
    %c0_14 = arith.constant 0 : index
    %c0_15 = arith.constant 0 : index
    %24 = vector.load %arg6[%c0_14, %c0_15] : memref<256x128xbf16, #tpu.memory_space<vmem>>, vector<256x128xbf16>
    %cst_16 = arith.constant dense<0.000000e+00> : vector<8x128xf32>
    %25 = tpu.matmul %23, %24, %cst_16 {dimension_numbers = #tpu.dot_dimension_numbers<[1], [0], [0], [1], [0, 0, 1, 1], [], []>} : vector<8x256xbf16>, vector<256x128xbf16>, vector<8x128xf32> -> vector<8x128xf32>
    %c0_17 = arith.constant 0 : index
    %c0_18 = arith.constant 0 : index
    %26 = vector.load %arg7[%c0_17, %c0_18] : memref<1x128xf32, #tpu.memory_space<vmem>>, vector<1x128xf32>
    %27 = vector.broadcast %26 : vector<1x128xf32> to vector<8x128xf32>
    %28 = arith.addf %25, %27 : vector<8x128xf32>
    %29 = arith.negf %28 : vector<8x128xf32>
    %30 = math.exp %29 : vector<8x128xf32>
    %cst_19 = arith.constant 1.000000e+00 : f32
    %31 = vector.broadcast %cst_19 : f32 to vector<8x128xf32>
    %32 = arith.addf %31, %30 : vector<8x128xf32>
    %33 = arith.divf %31, %32 : vector<8x128xf32>
    %c0_20 = arith.constant 0 : index
    %c0_21 = arith.constant 0 : index
    %34 = vector.load %arg8[%c0_20, %c0_21] : memref<8x128xf32, #tpu.memory_space<vmem>>, vector<8x128xf32>
    tpu.vector_store %arg8[%c0_20, %c0_21], %33 {strides = array<i32>} : memref<8x128xf32, #tpu.memory_space<vmem>>, vector<8x128xf32>,
    return
  }
  func.func @transform_0(%arg0: i32) -> (i32, i32) {
    %c0_i32 = arith.constant 0 : i32
    %c0_i32_0 = arith.constant 0 : i32
    return %arg0, %c0_i32 : i32, i32
  }
  func.func @transform_1(%arg0: i32) -> (i32, i32) {
    %c0_i32 = arith.constant 0 : i32
    %c0_i32_0 = arith.constant 0 : i32
    %c0_i32_1 = arith.constant 0 : i32
    return %c0_i32, %c0_i32_0 : i32, i32
  }
  func.func @transform_2(%arg0: i32) -> (i32, i32) {
    %c0_i32 = arith.constant 0 : i32
    %c0_i32_0 = arith.constant 0 : i32
    %c0_i32_1 = arith.constant 0 : i32
    return %c0_i32, %c0_i32_0 : i32, i32
  }
  func.func @transform_3(%arg0: i32) -> (i32, i32) {
    %c0_i32 = arith.constant 0 : i32
    %c0_i32_0 = arith.constant 0 : i32
    %c0_i32_1 = arith.constant 0 : i32
    return %c0_i32, %c0_i32_0 : i32, i32
  }
  func.func @transform_4(%arg0: i32) -> (i32, i32) {
    %c0_i32 = arith.constant 0 : i32
    %c0_i32_0 = arith.constant 0 : i32
    %c0_i32_1 = arith.constant 0 : i32
    return %c0_i32, %c0_i32_0 : i32, i32
  }
  func.func @transform_5(%arg0: i32) -> (i32, i32) {
    %c0_i32 = arith.constant 0 : i32
    %c0_i32_0 = arith.constant 0 : i32
    %c0_i32_1 = arith.constant 0 : i32
    return %c0_i32, %c0_i32_0 : i32, i32
  }
  func.func @transform_6(%arg0: i32) -> (i32, i32) {
    %c0_i32 = arith.constant 0 : i32
    %c0_i32_0 = arith.constant 0 : i32
    %c0_i32_1 = arith.constant 0 : i32
    return %c0_i32, %c0_i32_0 : i32, i32
  }
  func.func @transform_7(%arg0: i32) -> (i32, i32) {
    %c0_i32 = arith.constant 0 : i32
    %c0_i32_0 = arith.constant 0 : i32
    return %arg0, %c0_i32 : i32, i32
  }
}

</mosaic_0001>

<bundles_post_ra>
// kernel: tpu_custom_call.1
= control target key start
LH: loop header
LB: loop body
LE: loop exit
PB: predicated region body
PF: predicated region fallthrough
CT: control target
= control target key end

     0   :  { %12 = vsyncpa [#allocation3], 0  ;;  %s4808_s0 = inlined_call_operand.hbm [shape: f32[8,1024], index: 0, kind: input, shape index: {}]   ;;  %s4809_s1 = inlined_call_operand.hbm [shape: bf16[1024,512], index: 1, kind: input, shape index: {}]   ;;  %s4810_s2 = inlined_call_operand.hbm [shape: f32[1,512], index: 2, kind: input, shape index: {}]   ;;  %s4811_s3 = inlined_call_operand.hbm [shape: bf16[512,256], index: 3, kind: input, shape index: {}]   ;;  %s4812_s4 = inlined_call_operand.vmem [shape: f32[1,256], index: 4, kind: input, shape index: {}]   ;;  %s4813_s5 = inlined_call_operand.hbm [shape: bf16[256,128], index: 5, kind: input, shape index: {}]   ;;  %s4814_s6 = inlined_call_operand.vmem [shape: f32[1,128], index: 6, kind: input, shape index: {}]   ;;  %s4815_s7 = inlined_call_operand.hbm [shape: f32[8,128], index: 7, kind: output, shape index: {}]  }
   0x1   :  { %13 = vsyncpa [#allocation6], 0 }
   0x2   :  { %14 = vsyncpa [#allocation9], 0  ;;  %s31_s26 = sshll.u32 %s4809_s1, 4  ;;  %s32_s26 = int_to_ptr.hbm [resolvable:$true] %s31_s26 }
   0x3   :  { %15 = vsyncpa [#allocation4], 0  ;;  %s4645_s27 = smov [#allocation5]   ;;  %s55_s8 = sshll.u32 %s4811_s3, 4  ;;  %s56_s8 = int_to_ptr.hbm [resolvable:$true] %s55_s8 }
   0x4   :  { %s33_s28 = sshll.u32 %s4645_s27, 4  ;;  %s4646_s9 = smov 256   ;;  %s34_s28 = int_to_ptr.vmem [resolvable:$true] %s33_s28 }
   0x5   :  { %s4647_s10 = smov 16   ;;  %s4648_s11 = smov [#allocation8]  }
   0x6   :  { %39 = dma.hbm_to_vmem [thread:$0]  %s32_s26, 32768, %s34_s28, [#allocation6], %s4646_s9, %s4646_s9, %s4647_s10  }
   0x7   :  { %s57_s12 = sshll.u32 %s4648_s11, 4  ;;  %s4649_s13 = smov 128   ;;  %s58_s12 = int_to_ptr.vmem [resolvable:$true] %s57_s12 }
   0x8   :  { %s4650_s14 = smov 8   ;;  %s21_s16 = sshll.u32 %s4808_s0, 4  ;;  %s22_s16 = int_to_ptr.hbm [resolvable:$true] %s21_s16 }
   0x9   :  { %63 = dma.hbm_to_vmem [thread:$0]  %s56_s8, 8192, %s58_s12, [#allocation9], %s4649_s13, %s4649_s13, %s4650_s14  }
   0xa   :  { %s4651_s17 = smov [#allocation2]   ;;  %s45_s20 = sshll.u32 %s4810_s2, 4  ;;  %s46_s20 = int_to_ptr.hbm [resolvable:$true] %s45_s20 }
   0xb   :  { %s23_s18 = sshll.u32 %s4651_s17, 4  ;;  %s4652_s21 = smov [#allocation7]   ;;  %s24_s18 = int_to_ptr.vmem [resolvable:$true] %s23_s18 }
   0xc   :  { %26 = dma.hbm_to_vmem [thread:$0]  %s22_s16, 1024, %s24_s18, [#allocation3]  }
   0xd   :  { %s47_s22 = sshll.u32 %s4652_s21, 4  ;;  %s70_s25 = sshll.u32 %s4813_s5, 4  ;;  %s48_s22 = int_to_ptr.vmem [resolvable:$true] %s47_s22  ;;  %s71_s25 = int_to_ptr.hbm [resolvable:$true] %s70_s25 }
   0xe   :  { %50 = dma.hbm_to_vmem [thread:$0]  %s46_s20, 64, %s48_s22, [#allocation6]  }
   0xf   :  { %s4653_s0 = smov [#allocation10]   ;;  %s4654_s27 = smov 64  }
  0x10   :  { %s72_s26 = sshll.u32 %s4653_s0, 4  ;;  %s4655_s28 = smov 4   ;;  %s73_s26 = int_to_ptr.vmem [resolvable:$true] %s72_s26 }
  0x11   :  { %78 = dma.hbm_to_vmem [thread:$0]  %s71_s25, 2048, %s73_s26, [#allocation9], %s4654_s27, %s4654_s27, %s4655_s28  }
  0x12   :  { %4637 = dma.done.wait [#allocation3], 1024  }
  0x13   :  { %4638 = vsyncadd [#allocation3], 4294966272 }
  0x14   :  { %4639 = dma.done.wait [#allocation6], 32832  }
  0x15   :  { %4640 = vsyncadd [#allocation6], 4294934464 }
  0x16   :  { %4641 = dma.done.wait [#allocation9], 10240  }
  0x17   :  { %4642 = vsyncadd [#allocation9], 4294957056  ;;  %v2908_v0 = vld [vmem:[#allocation5 + $0xe0] sm:$0xf]  ;;  %v4169_v1 = vld [vmem:[#allocation5 + $0xec] sm:$0xf0] }
  0x18   :  { %v3036_v2 = vld [vmem:[#allocation5 + $0x1e0] sm:$0xf]  ;;  %v2909_v3 = vor.u32 %v4169_v1, %v2908_v0  ;;  %v4201_v4 = vld [vmem:[#allocation5 + $0x1ec] sm:$0xf0]  ;;  %s4656_s30 = smov [#allocation11]   ;;  %s2782_s10 = sshll.u32 %s4815_s7, 4  ;;  %s2783_s10 = int_to_ptr.hbm [resolvable:$true] %s2782_s10 }
  0x19   :  { %v3164_v5 = vld [vmem:[#allocation5 + $0x2e0] sm:$0xf]  ;;  %v4233_v6 = vld [vmem:[#allocation5 + $0x2ec] sm:$0xf0]  ;;  %v3037_v7 = vor.u32 %v4201_v4, %v3036_v2  ;;  %s2780_s8 = sshll.u32 %s4656_s30, 4  ;;  %s2781_s8 = int_to_ptr.vmem [resolvable:$true] %s2780_s8 }
  0x1a   :  { %v3165_v8 = vor.u32 %v4233_v6, %v3164_v5  ;;  %v3292_v9 = vld [vmem:[#allocation5 + $0x3e0] sm:$0xf]  ;;  %v4265_v10 = vld [vmem:[#allocation5 + $0x3ec] sm:$0xf0]  ;;  %1663 = vmatpush.bf16.msra.mxu0 %v2909_v3 }
  0x1b   :  { %v2892_v11 = vld [vmem:[#allocation5 + $0xc0] sm:$0xf]  ;;  %v3293_v12 = vor.u32 %v4265_v10, %v3292_v9  ;;  %v4165_v13 = vld [vmem:[#allocation5 + $0xcc] sm:$0xf0]  ;;  %1676 = vmatpush.bf16.msra.mxu1 %v3037_v7 }
  0x1c   :  { %v3020_v14 = vld [vmem:[#allocation5 + $0x1c0] sm:$0xf]  ;;  %v4197_v15 = vld [vmem:[#allocation5 + $0x1cc] sm:$0xf0]  ;;  %1689 = vmatpush.bf16.msra.mxu2 %v3165_v8  ;;  %v2893_v16 = vor.u32 %v4165_v13, %v2892_v11 }
  0x1d   :  { %v3021_v17 = vor.u32 %v4197_v15, %v3020_v14  ;;  %v3148_v18 = vld [vmem:[#allocation5 + $0x2c0] sm:$0xf]  ;;  %v4229_v19 = vld [vmem:[#allocation5 + $0x2cc] sm:$0xf0]  ;;  %1702 = vmatpush.bf16.msra.mxu3 %v3293_v12 }
  0x1e   :  { %v3276_v20 = vld [vmem:[#allocation5 + $0x3c0] sm:$0xf]  ;;  %v3149_v21 = vor.u32 %v4229_v19, %v3148_v18  ;;  %v4261_v22 = vld [vmem:[#allocation5 + $0x3cc] sm:$0xf0]  ;;  %1664 = vmatpush.bf16.msra.mxu0 %v2893_v16 }
  0x1f   :  { %v2876_v23 = vld [vmem:[#allocation5 + $0xa0] sm:$0xf]  ;;  %v4161_v24 = vld [vmem:[#allocation5 + $0xac] sm:$0xf0]  ;;  %v3277_v25 = vor.u32 %v4261_v22, %v3276_v20  ;;  %1677 = vmatpush.bf16.msra.mxu1 %v3021_v17 }
  0x20   :  { %v3004_v26 = vld [vmem:[#allocation5 + $0x1a0] sm:$0xf]  ;;  %v4193_v27 = vld [vmem:[#allocation5 + $0x1ac] sm:$0xf0]  ;;  %v2877_v29 = vor.u32 %v4161_v24, %v2876_v23  ;;  %1690 = vmatpush.bf16.msra.mxu2 %v3149_v21 }
  0x21   :  { %v3132_v28 = vld [vmem:[#allocation5 + $0x2a0] sm:$0xf]  ;;  %v4225_v30 = vld [vmem:[#allocation5 + $0x2ac] sm:$0xf0]  ;;  %v3005_v33 = vor.u32 %v4193_v27, %v3004_v26  ;;  %1703 = vmatpush.bf16.msra.mxu3 %v3277_v25 }
  0x22   :  { %v3260_v31 = vld [vmem:[#allocation5 + $0x3a0] sm:$0xf]  ;;  %v4257_v32 = vld [vmem:[#allocation5 + $0x3ac] sm:$0xf0]  ;;  %v3133_v34 = vor.u32 %v4225_v30, %v3132_v28  ;;  %1665 = vmatpush.bf16.msra.mxu0 %v2877_v29 }
  0x23   :  { %v2860_v35 = vld [vmem:[#allocation5 + $0x80] sm:$0xf]  ;;  %v4157_v36 = vld [vmem:[#allocation5 + $0x8c] sm:$0xf0]  ;;  %v3261_v38 = vor.u32 %v4257_v32, %v3260_v31  ;;  %1678 = vmatpush.bf16.msra.mxu1 %v3005_v33 }
  0x24   :  { %v2988_v37 = vld [vmem:[#allocation5 + $0x180] sm:$0xf]  ;;  %v4189_v39 = vld [vmem:[#allocation5 + $0x18c] sm:$0xf0]  ;;  %v2861_v44 = vor.u32 %v4157_v36, %v2860_v35  ;;  %1691 = vmatpush.bf16.msra.mxu2 %v3133_v34 }
  0x25   :  { %v3116_v40 = vld [vmem:[#allocation5 + $0x280] sm:$0xf]  ;;  %v4221_v41 = vld [vmem:[#allocation5 + $0x28c] sm:$0xf0]  ;;  %v2989_v45 = vor.u32 %v4189_v39, %v2988_v37  ;;  %1704 = vmatpush.bf16.msra.mxu3 %v3261_v38 }
  0x26   :  { %v3244_v42 = vld [vmem:[#allocation5 + $0x380] sm:$0xf]  ;;  %v4253_v43 = vld [vmem:[#allocation5 + $0x38c] sm:$0xf0]  ;;  %v3117_v46 = vor.u32 %v4221_v41, %v3116_v40  ;;  %1666 = vmatpush.bf16.msra.mxu0 %v2861_v44 }
  0x27   :  { %v2844_v47 = vld [vmem:[#allocation5 + $0x60] sm:$0xf]  ;;  %v4153_v48 = vld [vmem:[#allocation5 + $0x6c] sm:$0xf0]  ;;  %v3245_v50 = vor.u32 %v4253_v43, %v3244_v42  ;;  %1679 = vmatpush.bf16.msra.mxu1 %v2989_v45 }
  0x28   :  { %v2972_v49 = vld [vmem:[#allocation5 + $0x160] sm:$0xf]  ;;  %v4185_v51 = vld [vmem:[#allocation5 + $0x16c] sm:$0xf0]  ;;  %v2845_v56 = vor.u32 %v4153_v48, %v2844_v47  ;;  %1692 = vmatpush.bf16.msra.mxu2 %v3117_v46 }
  0x29   :  { %v3100_v52 = vld [vmem:[#allocation5 + $0x260] sm:$0xf]  ;;  %v4217_v53 = vld [vmem:[#allocation5 + $0x26c] sm:$0xf0]  ;;  %v2973_v57 = vor.u32 %v4185_v51, %v2972_v49  ;;  %1705 = vmatpush.bf16.msra.mxu3 %v3245_v50 }
  0x2a   :  { %v3228_v54 = vld [vmem:[#allocation5 + $0x360] sm:$0xf]  ;;  %v4249_v55 = vld [vmem:[#allocation5 + $0x36c] sm:$0xf0]  ;;  %v3101_v58 = vor.u32 %v4217_v53, %v3100_v52  ;;  %1667 = vmatpush.bf16.msra.mxu0 %v2845_v56 }
  0x2b   :  { %v2828_v59 = vld [vmem:[#allocation5 + $0x40] sm:$0xf]  ;;  %v4149_v60 = vld [vmem:[#allocation5 + $0x4c] sm:$0xf0]  ;;  %v3229_v62 = vor.u32 %v4249_v55, %v3228_v54  ;;  %1680 = vmatpush.bf16.msra.mxu1 %v2973_v57 }
  0x2c   :  { %v2956_v61 = vld [vmem:[#allocation5 + $0x140] sm:$0xf]  ;;  %v4181_v63 = vld [vmem:[#allocation5 + $0x14c] sm:$0xf0]  ;;  %v2829_v4 = vor.u32 %v4149_v60, %v2828_v59  ;;  %1693 = vmatpush.bf16.msra.mxu2 %v3101_v58 }
  0x2d   :  { %v3084_v0 = vld [vmem:[#allocation5 + $0x240] sm:$0xf]  ;;  %v4213_v1 = vld [vmem:[#allocation5 + $0x24c] sm:$0xf0]  ;;  %v2957_v5 = vor.u32 %v4181_v63, %v2956_v61  ;;  %1706 = vmatpush.bf16.msra.mxu3 %v3229_v62 }
  0x2e   :  { %v3212_v2 = vld [vmem:[#allocation5 + $0x340] sm:$0xf]  ;;  %v4245_v3 = vld [vmem:[#allocation5 + $0x34c] sm:$0xf0]  ;;  %v3085_v6 = vor.u32 %v4213_v1, %v3084_v0  ;;  %1668 = vmatpush.bf16.msra.mxu0 %v2829_v4 }
  0x2f   :  { %v2812_v7 = vld [vmem:[#allocation5 + $0x20] sm:$0xf]  ;;  %v4145_v8 = vld [vmem:[#allocation5 + $0x2c] sm:$0xf0]  ;;  %v3213_v10 = vor.u32 %v4245_v3, %v3212_v2  ;;  %1681 = vmatpush.bf16.msra.mxu1 %v2957_v5 }
  0x30   :  { %v2940_v9 = vld [vmem:[#allocation5 + $0x120] sm:$0xf]  ;;  %v4177_v11 = vld [vmem:[#allocation5 + $0x12c] sm:$0xf0]  ;;  %v2813_v16 = vor.u32 %v4145_v8, %v2812_v7  ;;  %1694 = vmatpush.bf16.msra.mxu2 %v3085_v6 }
  0x31   :  { %v3068_v12 = vld [vmem:[#allocation5 + $0x220] sm:$0xf]  ;;  %v4209_v13 = vld [vmem:[#allocation5 + $0x22c] sm:$0xf0]  ;;  %v2941_v19 = vor.u32 %v4177_v11, %v2940_v9  ;;  %1707 = vmatpush.bf16.msra.mxu3 %v3213_v10  ;;  %v104_v10 = vld [vmem:[#allocation2 + $0x18] sm:$0xff] }
  0x32   :  { %v3196_v14 = vld [vmem:[#allocation5 + $0x320] sm:$0xf]  ;;  %v4241_v15 = vld [vmem:[#allocation5 + $0x32c] sm:$0xf0]  ;;  %v3069_v20 = vor.u32 %v4209_v13, %v3068_v12  ;;  %1669 = vmatpush.bf16.msra.mxu0 %v2813_v16  ;;  %v102_v11 = vld [vmem:[#allocation2 + $0x8] sm:$0xff]  ;;  %v4717_v16 = vpack.c.bf16 %v104_v10, %v104_v10 }
  0x33   :  { %v2796_v17 = vld [vmem:[#allocation5] sm:$0xf]  ;;  %v4141_v18 = vld [vmem:[#allocation5 + $0xc] sm:$0xf0]  ;;  %v3197_v24 = vor.u32 %v4241_v15, %v3196_v14  ;;  %1682 = vmatpush.bf16.msra.mxu1 %v2941_v19  ;;  %v3038_v10 = vld [vmem:[#allocation5 + $0x1f0] sm:$0xf0] }
  0x34   :  { %v2924_v21 = vld [vmem:[#allocation5 + $0x100] sm:$0xf]  ;;  %v4173_v22 = vld [vmem:[#allocation5 + $0x10c] sm:$0xf0]  ;;  %v2797_v31 = vor.u32 %v4141_v18, %v2796_v17  ;;  %1695 = vmatpush.bf16.msra.mxu2 %v3069_v20  ;;  %v4719_v17 = vpack.c.bf16 %v102_v11, %v102_v11  ;;  %v4231_v11 = vld [vmem:[#allocation5 + $0x2e4] sm:$0xf] }
  0x35   :  { %v3052_v23 = vld [vmem:[#allocation5 + $0x200] sm:$0xf]  ;;  %v4205_v25 = vld [vmem:[#allocation5 + $0x20c] sm:$0xf0]  ;;  %v2925_v35 = vor.u32 %v4173_v22, %v2924_v21  ;;  %1708 = vmatpush.bf16.msra.mxu3 %v3197_v24 }
  0x36   :  { %v3180_v26 = vld [vmem:[#allocation5 + $0x300] sm:$0xf]  ;;  %v4237_v27 = vld [vmem:[#allocation5 + $0x30c] sm:$0xf0]  ;;  %v3053_v36 = vor.u32 %v4205_v25, %v3052_v23  ;;  %1670 = vmatpush.bf16.msra.mxu0 %v2797_v31 }
  0x37   :  { %v3420_v28 = vld [vmem:[#allocation5 + $0x4e0] sm:$0xf]  ;;  %v4297_v29 = vld [vmem:[#allocation5 + $0x4ec] sm:$0xf0]  ;;  %v3181_v39 = vor.u32 %v4237_v27, %v3180_v26  ;;  %1683 = vmatpush.bf16.msra.mxu1 %v2925_v35 }
  0x38   :  { %v3548_v30 = vld [vmem:[#allocation5 + $0x5e0] sm:$0xf]  ;;  %v4329_v32 = vld [vmem:[#allocation5 + $0x5ec] sm:$0xf0]  ;;  %v3421_v40 = vor.u32 %v4297_v29, %v3420_v28  ;;  %1696 = vmatpush.bf16.msra.mxu2 %v3053_v36 }
  0x39   :  { %v3676_v33 = vld [vmem:[#allocation5 + $0x6e0] sm:$0xf]  ;;  %v4361_v34 = vld [vmem:[#allocation5 + $0x6ec] sm:$0xf0]  ;;  %v3549_v41 = vor.u32 %v4329_v32, %v3548_v30  ;;  %1709 = vmatpush.bf16.msra.mxu3 %v3181_v39 }
  0x3a   :  { %v3804_v37 = vld [vmem:[#allocation5 + $0x7e0] sm:$0xf]  ;;  %v4393_v38 = vld [vmem:[#allocation5 + $0x7ec] sm:$0xf0]  ;;  %v3677_v42 = vor.u32 %v4361_v34, %v3676_v33  ;;  %1715 = vmatpush.bf16.msrb.mxu0 %v3421_v40  ;;  %1684 = vmatmul.bf16.vlgmr.msra.gmra.mxu1 %v4719_v17 }
  0x3b   :  { %v3404_v43 = vld [vmem:[#allocation5 + $0x4c0] sm:$0xf]  ;;  %v4293_v44 = vld [vmem:[#allocation5 + $0x4cc] sm:$0xf0]  ;;  %v3805_v46 = vor.u32 %v4393_v38, %v3804_v37  ;;  %1728 = vmatpush.bf16.msrb.mxu1 %v3549_v41 }
  0x3c   :  { %v3532_v45 = vld [vmem:[#allocation5 + $0x5c0] sm:$0xf]  ;;  %v4325_v47 = vld [vmem:[#allocation5 + $0x5cc] sm:$0xf0]  ;;  %v3405_v52 = vor.u32 %v4293_v44, %v3404_v43  ;;  %1741 = vmatpush.bf16.msrb.mxu2 %v3677_v42  ;;  %1710 = vmatmul.bf16.vlgmr.msra.gmra.mxu3 %v4717_v16 }
  0x3d   :  { %v3660_v48 = vld [vmem:[#allocation5 + $0x6c0] sm:$0xf]  ;;  %v4357_v49 = vld [vmem:[#allocation5 + $0x6cc] sm:$0xf0]  ;;  %v3533_v54 = vor.u32 %v4325_v47, %v3532_v45  ;;  %1754 = vmatpush.bf16.msrb.mxu3 %v3805_v46 }
  0x3e   :  { %v3788_v50 = vld [vmem:[#allocation5 + $0x7c0] sm:$0xf]  ;;  %v4389_v51 = vld [vmem:[#allocation5 + $0x7cc] sm:$0xf0]  ;;  %v3661_v55 = vor.u32 %v4357_v49, %v3660_v48  ;;  %1716 = vmatpush.bf16.msrb.mxu0 %v3405_v52 }
  0x3f   :  { %v3388_v53 = vld [vmem:[#allocation5 + $0x4a0] sm:$0xf]  ;;  %v4289_v56 = vld [vmem:[#allocation5 + $0x4ac] sm:$0xf0]  ;;  %v3789_v59 = vor.u32 %v4389_v51, %v3788_v50  ;;  %1729 = vmatpush.bf16.msrb.mxu1 %v3533_v54 }
  0x40   :  { %v3516_v57 = vld [vmem:[#allocation5 + $0x5a0] sm:$0xf]  ;;  %v103_v58 = vld [vmem:[#allocation2 + $0x10] sm:$0xff]  ;;  %v3389_v2 = vor.u32 %v4289_v56, %v3388_v53  ;;  %1742 = vmatpush.bf16.msrb.mxu2 %v3661_v55 }
  0x41   :  { %v4321_v60 = vld [vmem:[#allocation5 + $0x5ac] sm:$0xf0]  ;;  %v3644_v61 = vld [vmem:[#allocation5 + $0x6a0] sm:$0xf]  ;;  %v4712_v63 = vpack.c.bf16 %v103_v58, %v103_v58  ;;  %1755 = vmatpush.bf16.msrb.mxu3 %v3789_v59 }
  0x42   :  { %v4353_v62 = vld [vmem:[#allocation5 + $0x6ac] sm:$0xf0]  ;;  %v3772_v0 = vld [vmem:[#allocation5 + $0x7a0] sm:$0xf]  ;;  %v3517_v6 = vor.u32 %v4321_v60, %v3516_v57  ;;  %1717 = vmatpush.bf16.msrb.mxu0 %v3389_v2 }
  0x43   :  { %v4385_v1 = vld [vmem:[#allocation5 + $0x7ac] sm:$0xf0]  ;;  %v3372_v3 = vld [vmem:[#allocation5 + $0x480] sm:$0xf]  ;;  %1697 = vmatmul.bf16.vlgmr.msra.gmra.mxu2 %v4712_v63  ;;  %v3645_v7 = vor.u32 %v4353_v62, %v3644_v61 }
  0x44   :  { %v4285_v4 = vld [vmem:[#allocation5 + $0x48c] sm:$0xf0]  ;;  %v101_v5 = vld [vmem:[#allocation2] sm:$0xff]  ;;  %v3773_v12 = vor.u32 %v4385_v1, %v3772_v0  ;;  %1730 = vmatpush.bf16.msrb.mxu1 %v3517_v6  ;;  %v2910_v6 = vld [vmem:[#allocation5 + $0xf0] sm:$0xf0] }
  0x45   :  { %v3500_v8 = vld [vmem:[#allocation5 + $0x580] sm:$0xf]  ;;  %v4715_v9 = vpack.c.bf16 %v101_v5, %v101_v5  ;;  %v4317_v13 = vld [vmem:[#allocation5 + $0x58c] sm:$0xf0]  ;;  %v3373_v20 = vor.u32 %v4285_v4, %v3372_v3  ;;  %1743 = vmatpush.bf16.msrb.mxu2 %v3645_v7  ;;  %v4167_v5 = vld [vmem:[#allocation5 + $0xe4] sm:$0xf] }
  0x46   :  { %v3628_v14 = vld [vmem:[#allocation5 + $0x680] sm:$0xf]  ;;  %v4349_v15 = vld [vmem:[#allocation5 + $0x68c] sm:$0xf0]  ;;  %v3501_v21 = vor.u32 %v4317_v13, %v3500_v8  ;;  %1756 = vmatpush.bf16.msrb.mxu3 %v3773_v12  ;;  %v4199_v7 = vld [vmem:[#allocation5 + $0x1e4] sm:$0xf] }
  0x47   :  { %v3756_v18 = vld [vmem:[#allocation5 + $0x780] sm:$0xf]  ;;  %v4381_v19 = vld [vmem:[#allocation5 + $0x78c] sm:$0xf0]  ;;  %1671 = vmatmul.bf16.vlgmr.msra.gmra.mxu0 %v4715_v9  ;;  %v3629_v22 = vor.u32 %v4349_v15, %v3628_v14  ;;  %v3166_v12 = vld [vmem:[#allocation5 + $0x2f0] sm:$0xf0] }
  0x48   :  { %v3356_v23 = vld [vmem:[#allocation5 + $0x460] sm:$0xf]  ;;  %v4281_v24 = vld [vmem:[#allocation5 + $0x46c] sm:$0xf0]  ;;  %v3757_v26 = vor.u32 %v4381_v19, %v3756_v18  ;;  %1718 = vmatpush.bf16.msrb.mxu0 %v3373_v20  ;;  %1731 = vmatpush.bf16.msrb.mxu1 %v3501_v21  ;;  %v4263_v15 = vld [vmem:[#allocation5 + $0x3e4] sm:$0xf]  ;;  %v2913_v21 = vor.u32 %v4167_v5, %v2910_v6 }
  0x49   :  { %v3484_v25 = vld [vmem:[#allocation5 + $0x560] sm:$0xf]  ;;  %v4313_v27 = vld [vmem:[#allocation5 + $0x56c] sm:$0xf0]  ;;  %v3357_v32 = vor.u32 %v4281_v24, %v3356_v23  ;;  %1744 = vmatpush.bf16.msrb.mxu2 %v3629_v22  ;;  %v3294_v18 = vld [vmem:[#allocation5 + $0x3f0] sm:$0xf0] }
  0x4a   :  { %v3612_v28 = vld [vmem:[#allocation5 + $0x660] sm:$0xf]  ;;  %v4345_v29 = vld [vmem:[#allocation5 + $0x66c] sm:$0xf0]  ;;  %v3485_v33 = vor.u32 %v4313_v27, %v3484_v25  ;;  %1757 = vmatpush.bf16.msrb.mxu3 %v3757_v26  ;;  %v4163_v22 = vld [vmem:[#allocation5 + $0xc4] sm:$0xf]  ;;  %v3041_v25 = vor.u32 %v4199_v7, %v3038_v10  ;;  %v3169_v26 = vor.u32 %v4231_v11, %v3166_v12 }
  0x4b   :  { %v3740_v30 = vld [vmem:[#allocation5 + $0x760] sm:$0xf]  ;;  %v4377_v31 = vld [vmem:[#allocation5 + $0x76c] sm:$0xf0]  ;;  %v3613_v34 = vor.u32 %v4345_v29, %v3612_v28  ;;  %v108_v24 = vld [vmem:[#allocation2 + $0x38] sm:$0xff] }
  0x4c   :  { %v3340_v35 = vld [vmem:[#allocation5 + $0x440] sm:$0xf]  ;;  %v4277_v36 = vld [vmem:[#allocation5 + $0x44c] sm:$0xf0]  ;;  %v3741_v38 = vor.u32 %v4377_v31, %v3740_v30  ;;  %1719 = vmatpush.bf16.msrb.mxu0 %v3357_v32  ;;  %1732 = vmatpush.bf16.msrb.mxu1 %v3485_v33  ;;  %v2894_v27 = vld [vmem:[#allocation5 + $0xd0] sm:$0xf0]  ;;  %v3297_v30 = vor.u32 %v4263_v15, %v3294_v18 }
  0x4d   :  { %v3468_v37 = vld [vmem:[#allocation5 + $0x540] sm:$0xf]  ;;  %v4309_v39 = vld [vmem:[#allocation5 + $0x54c] sm:$0xf0]  ;;  %v3341_v44 = vor.u32 %v4277_v36, %v3340_v35  ;;  %1745 = vmatpush.bf16.msrb.mxu2 %v3613_v34  ;;  %v4195_v28 = vld [vmem:[#allocation5 + $0x1c4] sm:$0xf] }
  0x4e   :  { %v3596_v40 = vld [vmem:[#allocation5 + $0x640] sm:$0xf]  ;;  %v4341_v41 = vld [vmem:[#allocation5 + $0x64c] sm:$0xf0]  ;;  %v3469_v45 = vor.u32 %v4309_v39, %v3468_v37  ;;  %1758 = vmatpush.bf16.msrb.mxu3 %v3741_v38  ;;  %v106_v29 = vld [vmem:[#allocation2 + $0x28] sm:$0xff]  ;;  %v4728_v38 = vpack.c.bf16 %v108_v24, %v108_v24  ;;  %v2897_v39 = vor.u32 %v4163_v22, %v2894_v27 }
  0x4f   :  { %v3724_v42 = vld [vmem:[#allocation5 + $0x740] sm:$0xf]  ;;  %v4373_v43 = vld [vmem:[#allocation5 + $0x74c] sm:$0xf0]  ;;  %v3597_v46 = vor.u32 %v4341_v41, %v3596_v40  ;;  %v3022_v31 = vld [vmem:[#allocation5 + $0x1d0] sm:$0xf0]  ;;  %v4730_v40 = vpack.c.bf16 %v106_v29, %v106_v29 }
  0x50   :  { %v3324_v47 = vld [vmem:[#allocation5 + $0x420] sm:$0xf]  ;;  %v4273_v48 = vld [vmem:[#allocation5 + $0x42c] sm:$0xf0]  ;;  %v3725_v50 = vor.u32 %v4373_v43, %v3724_v42  ;;  %1720 = vmatpush.bf16.msrb.mxu0 %v3341_v44  ;;  %1733 = vmatpush.bf16.msrb.mxu1 %v3469_v45  ;;  %v4227_v32 = vld [vmem:[#allocation5 + $0x2c4] sm:$0xf]  ;;  %v3025_v41 = vor.u32 %v4195_v28, %v3022_v31 }
  0x51   :  { %v3452_v49 = vld [vmem:[#allocation5 + $0x520] sm:$0xf]  ;;  %v4305_v51 = vld [vmem:[#allocation5 + $0x52c] sm:$0xf0]  ;;  %v3325_v56 = vor.u32 %v4273_v48, %v3324_v47  ;;  %1746 = vmatpush.bf16.msrb.mxu2 %v3597_v46  ;;  %v3150_v33 = vld [vmem:[#allocation5 + $0x2d0] sm:$0xf0] }
  0x52   :  { %v3580_v52 = vld [vmem:[#allocation5 + $0x620] sm:$0xf]  ;;  %v4337_v53 = vld [vmem:[#allocation5 + $0x62c] sm:$0xf0]  ;;  %v3453_v59 = vor.u32 %v4305_v51, %v3452_v49  ;;  %1759 = vmatpush.bf16.msrb.mxu3 %v3725_v50  ;;  %v4259_v35 = vld [vmem:[#allocation5 + $0x3c4] sm:$0xf]  ;;  %v3153_v42 = vor.u32 %v4227_v32, %v3150_v33 }
  0x53   :  { %v3708_v54 = vld [vmem:[#allocation5 + $0x720] sm:$0xf]  ;;  %v4369_v55 = vld [vmem:[#allocation5 + $0x72c] sm:$0xf0]  ;;  %v3581_v60 = vor.u32 %v4337_v53, %v3580_v52  ;;  %v3278_v36 = vld [vmem:[#allocation5 + $0x3d0] sm:$0xf0] }
  0x54   :  { %v3308_v57 = vld [vmem:[#allocation5 + $0x400] sm:$0xf]  ;;  %v4269_v58 = vld [vmem:[#allocation5 + $0x40c] sm:$0xf0]  ;;  %v3709_v1 = vor.u32 %v4369_v55, %v3708_v54  ;;  %1721 = vmatpush.bf16.msrb.mxu0 %v3325_v56  ;;  %1734 = vmatpush.bf16.msrb.mxu1 %v3453_v59  ;;  %v4159_v43 = vld [vmem:[#allocation5 + $0xa4] sm:$0xf]  ;;  %v3281_v46 = vor.u32 %v4259_v35, %v3278_v36 }
  0x55   :  { %v3436_v61 = vld [vmem:[#allocation5 + $0x500] sm:$0xf]  ;;  %v4301_v62 = vld [vmem:[#allocation5 + $0x50c] sm:$0xf0]  ;;  %v3309_v8 = vor.u32 %v4269_v58, %v3308_v57  ;;  %1747 = vmatpush.bf16.msrb.mxu2 %v3581_v60  ;;  %v2878_v44 = vld [vmem:[#allocation5 + $0xb0] sm:$0xf0] }
  0x56   :  { %v3564_v0 = vld [vmem:[#allocation5 + $0x600] sm:$0xf]  ;;  %v4333_v2 = vld [vmem:[#allocation5 + $0x60c] sm:$0xf0]  ;;  %v3437_v13 = vor.u32 %v4301_v62, %v3436_v61  ;;  %1760 = vmatpush.bf16.msrb.mxu3 %v3709_v1  ;;  %v4191_v45 = vld [vmem:[#allocation5 + $0x1a4] sm:$0xf]  ;;  %v2881_v52 = vor.u32 %v4159_v43, %v2878_v44 }
  0x57   :  { %v3692_v3 = vld [vmem:[#allocation5 + $0x700] sm:$0xf]  ;;  %v4365_v4 = vld [vmem:[#allocation5 + $0x70c] sm:$0xf0]  ;;  %v3565_v14 = vor.u32 %v4333_v2, %v3564_v0  ;;  %v3006_v47 = vld [vmem:[#allocation5 + $0x1b0] sm:$0xf0] }
  0x58   :  { %v107_v19 = vld [vmem:[#allocation2 + $0x30] sm:$0xff]  ;;  %v3693_v20 = vor.u32 %v4365_v4, %v3692_v3  ;;  %v105_v23 = vld [vmem:[#allocation2 + $0x20] sm:$0xff]  ;;  %1722 = vmatpush.bf16.msrb.mxu0 %v3309_v8  ;;  %1735 = vmatpush.bf16.msrb.mxu1 %v3437_v13  ;;  %v3009_v53 = vor.u32 %v4191_v45, %v3006_v47 }
  0x59   :  { %v4724_v34 = vpack.c.bf16 %v107_v19, %v107_v19  ;;  %1748 = vmatpush.bf16.msrb.mxu2 %v3565_v14  ;;  %v4726_v37 = vpack.c.bf16 %v105_v23, %v105_v23  ;;  %v4223_v48 = vld [vmem:[#allocation5 + $0x2a4] sm:$0xf]  ;;  %v3134_v49 = vld [vmem:[#allocation5 + $0x2b0] sm:$0xf0] }
  0x5a   :  { %1761 = vmatpush.bf16.msrb.mxu3 %v3693_v20  ;;  %v4255_v50 = vld [vmem:[#allocation5 + $0x3a4] sm:$0xf]  ;;  %v3262_v51 = vld [vmem:[#allocation5 + $0x3b0] sm:$0xf0]  ;;  %v3137_v54 = vor.u32 %v4223_v48, %v3134_v49 }
  0x5b   :  { %1723 = vmatmul.bf16.vlgmr.msrb.gmra.mxu0 %v4726_v37  ;;  %1736 = vmatmul.bf16.vlgmr.msrb.gmra.mxu1 %v4730_v40  ;;  %v4155_v55 = vld [vmem:[#allocation5 + $0x84] sm:$0xf]  ;;  %v2862_v56 = vld [vmem:[#allocation5 + $0x90] sm:$0xf0]  ;;  %v3265_v58 = vor.u32 %v4255_v50, %v3262_v51 }
  0x5c   :  { %1767 = vmatpush.bf16.msra.mxu0 %v2913_v21  ;;  %1780 = vmatpush.bf16.msra.mxu1 %v3041_v25  ;;  %v4187_v57 = vld [vmem:[#allocation5 + $0x184] sm:$0xf]  ;;  %v2990_v59 = vld [vmem:[#allocation5 + $0x190] sm:$0xf0]  ;;  %v2865_v1 = vor.u32 %v4155_v55, %v2862_v56 }
  0x5d   :  { %1793 = vmatpush.bf16.msra.mxu2 %v3169_v26  ;;  %1762 = vmatmul.bf16.vlgmr.msrb.gmra.mxu3 %v4728_v38  ;;  %v4219_v60 = vld [vmem:[#allocation5 + $0x284] sm:$0xf]  ;;  %v3118_v61 = vld [vmem:[#allocation5 + $0x290] sm:$0xf0]  ;;  %v2993_v2 = vor.u32 %v4187_v57, %v2990_v59 }
  0x5e   :  { %1806 = vmatpush.bf16.msra.mxu3 %v3297_v30  ;;  %1749 = vmatmul.bf16.vlgmr.msrb.gmra.mxu2 %v4724_v34  ;;  %v4251_v62 = vld [vmem:[#allocation5 + $0x384] sm:$0xf]  ;;  %v3246_v0 = vld [vmem:[#allocation5 + $0x390] sm:$0xf0]  ;;  %v3121_v3 = vor.u32 %v4219_v60, %v3118_v61 }
  0x5f   :  { %v4151_v4 = vld [vmem:[#allocation5 + $0x64] sm:$0xf]  ;;  %v2846_v5 = vld [vmem:[#allocation5 + $0x70] sm:$0xf0]  ;;  %v3249_v7 = vor.u32 %v4251_v62, %v3246_v0 }
  0x60   :  { %1768 = vmatpush.bf16.msra.mxu0 %v2897_v39  ;;  %1781 = vmatpush.bf16.msra.mxu1 %v3025_v41  ;;  %v4183_v6 = vld [vmem:[#allocation5 + $0x164] sm:$0xf]  ;;  %v2974_v8 = vld [vmem:[#allocation5 + $0x170] sm:$0xf0]  ;;  %v2849_v14 = vor.u32 %v4151_v4, %v2846_v5 }
  0x61   :  { %1794 = vmatpush.bf16.msra.mxu2 %v3153_v42  ;;  %v4215_v10 = vld [vmem:[#allocation5 + $0x264] sm:$0xf]  ;;  %v3102_v11 = vld [vmem:[#allocation5 + $0x270] sm:$0xf0]  ;;  %v2977_v15 = vor.u32 %v4183_v6, %v2974_v8 }
  0x62   :  { %1807 = vmatpush.bf16.msra.mxu3 %v3281_v46  ;;  %v4247_v12 = vld [vmem:[#allocation5 + $0x364] sm:$0xf]  ;;  %v3230_v13 = vld [vmem:[#allocation5 + $0x370] sm:$0xf0]  ;;  %v3105_v18 = vor.u32 %v4215_v10, %v3102_v11 }
  0x63   :  { %v4147_v19 = vld [vmem:[#allocation5 + $0x44] sm:$0xf]  ;;  %v2830_v20 = vld [vmem:[#allocation5 + $0x50] sm:$0xf0]  ;;  %v3233_v22 = vor.u32 %v4247_v12, %v3230_v13 }
  0x64   :  { %1769 = vmatpush.bf16.msra.mxu0 %v2881_v52  ;;  %1782 = vmatpush.bf16.msra.mxu1 %v3009_v53  ;;  %v4179_v21 = vld [vmem:[#allocation5 + $0x144] sm:$0xf]  ;;  %v2958_v23 = vld [vmem:[#allocation5 + $0x150] sm:$0xf0]  ;;  %v2833_v28 = vor.u32 %v4147_v19, %v2830_v20 }
  0x65   :  { %1795 = vmatpush.bf16.msra.mxu2 %v3137_v54  ;;  %v4211_v24 = vld [vmem:[#allocation5 + $0x244] sm:$0xf]  ;;  %v3086_v25 = vld [vmem:[#allocation5 + $0x250] sm:$0xf0]  ;;  %v2961_v29 = vor.u32 %v4179_v21, %v2958_v23 }
  0x66   :  { %1808 = vmatpush.bf16.msra.mxu3 %v3265_v58  ;;  %v4243_v26 = vld [vmem:[#allocation5 + $0x344] sm:$0xf]  ;;  %v3214_v27 = vld [vmem:[#allocation5 + $0x350] sm:$0xf0]  ;;  %v3089_v30 = vor.u32 %v4211_v24, %v3086_v25 }
  0x67   :  { %v4143_v31 = vld [vmem:[#allocation5 + $0x24] sm:$0xf]  ;;  %v2814_v32 = vld [vmem:[#allocation5 + $0x30] sm:$0xf0]  ;;  %v3217_v35 = vor.u32 %v4243_v26, %v3214_v27 }
  0x68   :  { %1770 = vmatpush.bf16.msra.mxu0 %v2865_v1  ;;  %1783 = vmatpush.bf16.msra.mxu1 %v2993_v2  ;;  %v4175_v33 = vld [vmem:[#allocation5 + $0x124] sm:$0xf]  ;;  %v2942_v36 = vld [vmem:[#allocation5 + $0x130] sm:$0xf0]  ;;  %v2817_v44 = vor.u32 %v4143_v31, %v2814_v32 }
  0x69   :  { %1796 = vmatpush.bf16.msra.mxu2 %v3121_v3  ;;  %v4207_v39 = vld [vmem:[#allocation5 + $0x224] sm:$0xf]  ;;  %v3070_v41 = vld [vmem:[#allocation5 + $0x230] sm:$0xf0]  ;;  %v2945_v47 = vor.u32 %v4175_v33, %v2942_v36 }
  0x6a   :  { %1809 = vmatpush.bf16.msra.mxu3 %v3249_v7  ;;  %v4239_v42 = vld [vmem:[#allocation5 + $0x324] sm:$0xf]  ;;  %v3198_v43 = vld [vmem:[#allocation5 + $0x330] sm:$0xf0]  ;;  %v3073_v48 = vor.u32 %v4207_v39, %v3070_v41 }
  0x6b   :  { %v4139_v45 = vld [vmem:[#allocation5 + $0x4] sm:$0xf]  ;;  %v2798_v46 = vld [vmem:[#allocation5 + $0x10] sm:$0xf0]  ;;  %v3201_v52 = vor.u32 %v4239_v42, %v3198_v43 }
  0x6c   :  { %1771 = vmatpush.bf16.msra.mxu0 %v2849_v14  ;;  %1784 = vmatpush.bf16.msra.mxu1 %v2977_v15  ;;  %v4171_v49 = vld [vmem:[#allocation5 + $0x104] sm:$0xf]  ;;  %v2926_v50 = vld [vmem:[#allocation5 + $0x110] sm:$0xf0]  ;;  %v2801_v59 = vor.u32 %v4139_v45, %v2798_v46 }
  0x6d   :  { %1797 = vmatpush.bf16.msra.mxu2 %v3105_v18  ;;  %v4203_v51 = vld [vmem:[#allocation5 + $0x204] sm:$0xf]  ;;  %v3054_v53 = vld [vmem:[#allocation5 + $0x210] sm:$0xf0]  ;;  %v2929_v0 = vor.u32 %v4171_v49, %v2926_v50 }
  0x6e   :  { %1810 = vmatpush.bf16.msra.mxu3 %v3233_v22  ;;  %v4235_v54 = vld [vmem:[#allocation5 + $0x304] sm:$0xf]  ;;  %v3182_v55 = vld [vmem:[#allocation5 + $0x310] sm:$0xf0]  ;;  %v3057_v1 = vor.u32 %v4203_v51, %v3054_v53 }
  0x6f   :  { %v4295_v56 = vld [vmem:[#allocation5 + $0x4e4] sm:$0xf]  ;;  %v3422_v57 = vld [vmem:[#allocation5 + $0x4f0] sm:$0xf0]  ;;  %v3185_v4 = vor.u32 %v4235_v54, %v3182_v55 }
  0x70   :  { %1772 = vmatpush.bf16.msra.mxu0 %v2833_v28  ;;  %1785 = vmatpush.bf16.msra.mxu1 %v2961_v29  ;;  %v4327_v58 = vld [vmem:[#allocation5 + $0x5e4] sm:$0xf]  ;;  %v3550_v60 = vld [vmem:[#allocation5 + $0x5f0] sm:$0xf0]  ;;  %v3425_v5 = vor.u32 %v4295_v56, %v3422_v57 }
  0x71   :  { %1798 = vmatpush.bf16.msra.mxu2 %v3089_v30  ;;  %v4359_v61 = vld [vmem:[#allocation5 + $0x6e4] sm:$0xf]  ;;  %v3678_v62 = vld [vmem:[#allocation5 + $0x6f0] sm:$0xf0]  ;;  %v3553_v6 = vor.u32 %v4327_v58, %v3550_v60 }
  0x72   :  { %1811 = vmatpush.bf16.msra.mxu3 %v3217_v35  ;;  %v4391_v2 = vld [vmem:[#allocation5 + $0x7e4] sm:$0xf]  ;;  %v3806_v3 = vld [vmem:[#allocation5 + $0x7f0] sm:$0xf0]  ;;  %v3681_v7 = vor.u32 %v4359_v61, %v3678_v62 }
  0x73   :  { %v4291_v8 = vld [vmem:[#allocation5 + $0x4c4] sm:$0xf]  ;;  %v3406_v10 = vld [vmem:[#allocation5 + $0x4d0] sm:$0xf0]  ;;  %v3809_v12 = vor.u32 %v4391_v2, %v3806_v3 }
  0x74   :  { %1773 = vmatpush.bf16.msra.mxu0 %v2817_v44  ;;  %1786 = vmatpush.bf16.msra.mxu1 %v2945_v47  ;;  %v4323_v11 = vld [vmem:[#allocation5 + $0x5c4] sm:$0xf]  ;;  %v3534_v13 = vld [vmem:[#allocation5 + $0x5d0] sm:$0xf0]  ;;  %v3409_v20 = vor.u32 %v4291_v8, %v3406_v10 }
  0x75   :  { %1799 = vmatpush.bf16.msra.mxu2 %v3073_v48  ;;  %v4355_v14 = vld [vmem:[#allocation5 + $0x6c4] sm:$0xf]  ;;  %v3662_v15 = vld [vmem:[#allocation5 + $0x6d0] sm:$0xf0]  ;;  %v3537_v21 = vor.u32 %v4323_v11, %v3534_v13 }
  0x76   :  { %1812 = vmatpush.bf16.msra.mxu3 %v3201_v52  ;;  %v4387_v18 = vld [vmem:[#allocation5 + $0x7c4] sm:$0xf]  ;;  %v3790_v19 = vld [vmem:[#allocation5 + $0x7d0] sm:$0xf0]  ;;  %v3665_v22 = vor.u32 %v4355_v14, %v3662_v15 }
  0x77   :  { %v4287_v23 = vld [vmem:[#allocation5 + $0x4a4] sm:$0xf]  ;;  %v3390_v24 = vld [vmem:[#allocation5 + $0x4b0] sm:$0xf0]  ;;  %v3793_v26 = vor.u32 %v4387_v18, %v3790_v19 }
  0x78   :  { %1774 = vmatpush.bf16.msra.mxu0 %v2801_v59  ;;  %1787 = vmatpush.bf16.msra.mxu1 %v2929_v0  ;;  %v4319_v25 = vld [vmem:[#allocation5 + $0x5a4] sm:$0xf]  ;;  %v3518_v27 = vld [vmem:[#allocation5 + $0x5b0] sm:$0xf0]  ;;  %v3393_v32 = vor.u32 %v4287_v23, %v3390_v24 }
  0x79   :  { %1800 = vmatpush.bf16.msra.mxu2 %v3057_v1  ;;  %v4351_v28 = vld [vmem:[#allocation5 + $0x6a4] sm:$0xf]  ;;  %v3646_v29 = vld [vmem:[#allocation5 + $0x6b0] sm:$0xf0]  ;;  %v3521_v33 = vor.u32 %v4319_v25, %v3518_v27 }
  0x7a   :  { %1813 = vmatpush.bf16.msra.mxu3 %v3185_v4  ;;  %v4383_v30 = vld [vmem:[#allocation5 + $0x7a4] sm:$0xf]  ;;  %v3774_v31 = vld [vmem:[#allocation5 + $0x7b0] sm:$0xf0]  ;;  %v3649_v35 = vor.u32 %v4351_v28, %v3646_v29 }
  0x7b   :  { %1775 = vmatmul.bf16.vlgmr.msra.gmra.mxu0 %v4715_v9  ;;  %1788 = vmatmul.bf16.vlgmr.msra.gmra.mxu1 %v4719_v17  ;;  %v4283_v36 = vld [vmem:[#allocation5 + $0x484] sm:$0xf]  ;;  %v3374_v39 = vld [vmem:[#allocation5 + $0x490] sm:$0xf0]  ;;  %v3777_v42 = vor.u32 %v4383_v30, %v3774_v31 }
  0x7c   :  { %1819 = vmatpush.bf16.msrb.mxu0 %v3425_v5  ;;  %1832 = vmatpush.bf16.msrb.mxu1 %v3553_v6  ;;  %v4315_v41 = vld [vmem:[#allocation5 + $0x584] sm:$0xf]  ;;  %v3502_v43 = vld [vmem:[#allocation5 + $0x590] sm:$0xf0]  ;;  %v3377_v48 = vor.u32 %v4283_v36, %v3374_v39  ;;  %v2916_v39 = vld [vmem:[#allocation5 + $0xe8] sm:$0xf] }
  0x7d   :  { %1845 = vmatpush.bf16.msrb.mxu2 %v3681_v7  ;;  %1814 = vmatmul.bf16.vlgmr.msra.gmra.mxu3 %v4717_v16  ;;  %v4347_v44 = vld [vmem:[#allocation5 + $0x684] sm:$0xf]  ;;  %v3630_v45 = vld [vmem:[#allocation5 + $0x690] sm:$0xf0]  ;;  %v3505_v49 = vor.u32 %v4315_v41, %v3502_v43  ;;  %v4170_v41 = vld [vmem:[#allocation5 + $0xf4] sm:$0xf0] }
  0x7e   :  { %1858 = vmatpush.bf16.msrb.mxu3 %v3809_v12  ;;  %1801 = vmatmul.bf16.vlgmr.msra.gmra.mxu2 %v4712_v63  ;;  %v4379_v46 = vld [vmem:[#allocation5 + $0x784] sm:$0xf]  ;;  %v3758_v47 = vld [vmem:[#allocation5 + $0x790] sm:$0xf0]  ;;  %v3633_v50 = vor.u32 %v4347_v44, %v3630_v45  ;;  %v4202_v44 = vld [vmem:[#allocation5 + $0x1f4] sm:$0xf0] }
  0x7f   :  { %v4279_v51 = vld [vmem:[#allocation5 + $0x464] sm:$0xf]  ;;  %v3358_v52 = vld [vmem:[#allocation5 + $0x470] sm:$0xf0]  ;;  %v3761_v54 = vor.u32 %v4379_v46, %v3758_v47  ;;  %v3172_v45 = vld [vmem:[#allocation5 + $0x2e8] sm:$0xf] }
  0x80   :  { %1820 = vmatpush.bf16.msrb.mxu0 %v3409_v20  ;;  %1833 = vmatpush.bf16.msrb.mxu1 %v3537_v21  ;;  %v4311_v53 = vld [vmem:[#allocation5 + $0x564] sm:$0xf]  ;;  %v3486_v55 = vld [vmem:[#allocation5 + $0x570] sm:$0xf0]  ;;  %v3361_v60 = vor.u32 %v4279_v51, %v3358_v52  ;;  %v4234_v46 = vld [vmem:[#allocation5 + $0x2f4] sm:$0xf0]  ;;  %v2917_v52 = vor.u32 %v4170_v41, %v2916_v39 }
  0x81   :  { %1846 = vmatpush.bf16.msrb.mxu2 %v3665_v22  ;;  %v4343_v56 = vld [vmem:[#allocation5 + $0x664] sm:$0xf]  ;;  %v3614_v57 = vld [vmem:[#allocation5 + $0x670] sm:$0xf0]  ;;  %v3489_v61 = vor.u32 %v4311_v53, %v3486_v55  ;;  %v2900_v55 = vld [vmem:[#allocation5 + $0xc8] sm:$0xf] }
  0x82   :  { %1859 = vmatpush.bf16.msrb.mxu3 %v3793_v26  ;;  %v4375_v58 = vld [vmem:[#allocation5 + $0x764] sm:$0xf]  ;;  %v3742_v59 = vld [vmem:[#allocation5 + $0x770] sm:$0xf0]  ;;  %v3617_v62 = vor.u32 %v4343_v56, %v3614_v57  ;;  %v4166_v56 = vld [vmem:[#allocation5 + $0xd4] sm:$0xf0] }
  0x83   :  { %v4275_v0 = vld [vmem:[#allocation5 + $0x444] sm:$0xf]  ;;  %v3342_v1 = vld [vmem:[#allocation5 + $0x450] sm:$0xf0]  ;;  %v3745_v3 = vor.u32 %v4375_v58, %v3742_v59  ;;  %v3028_v57 = vld [vmem:[#allocation5 + $0x1c8] sm:$0xf] }
  0x84   :  { %1821 = vmatpush.bf16.msrb.mxu0 %v3393_v32  ;;  %1834 = vmatpush.bf16.msrb.mxu1 %v3521_v33  ;;  %v4307_v2 = vld [vmem:[#allocation5 + $0x544] sm:$0xf]  ;;  %v3470_v4 = vld [vmem:[#allocation5 + $0x550] sm:$0xf0]  ;;  %v3345_v10 = vor.u32 %v4275_v0, %v3342_v1  ;;  %v4198_v59 = vld [vmem:[#allocation5 + $0x1d4] sm:$0xf0]  ;;  %v2901_v1 = vor.u32 %v4166_v56, %v2900_v55 }
  0x85   :  { %1847 = vmatpush.bf16.msrb.mxu2 %v3649_v35  ;;  %v4339_v5 = vld [vmem:[#allocation5 + $0x644] sm:$0xf]  ;;  %v3598_v6 = vld [vmem:[#allocation5 + $0x650] sm:$0xf0]  ;;  %v3473_v11 = vor.u32 %v4307_v2, %v3470_v4  ;;  %v4262_v0 = vld [vmem:[#allocation5 + $0x3d4] sm:$0xf0]  ;;  %v3029_v2 = vor.u32 %v4198_v59, %v3028_v57 }
  0x86   :  { %1860 = vmatpush.bf16.msrb.mxu3 %v3777_v42  ;;  %v4371_v7 = vld [vmem:[#allocation5 + $0x744] sm:$0xf]  ;;  %v3726_v8 = vld [vmem:[#allocation5 + $0x750] sm:$0xf0]  ;;  %v3601_v12 = vor.u32 %v4339_v5, %v3598_v6  ;;  %v3044_v42 = vld [vmem:[#allocation5 + $0x1e8] sm:$0xf] }
  0x87   :  { %v4271_v13 = vld [vmem:[#allocation5 + $0x424] sm:$0xf]  ;;  %v3326_v14 = vld [vmem:[#allocation5 + $0x430] sm:$0xf0]  ;;  %v3729_v18 = vor.u32 %v4371_v7, %v3726_v8  ;;  %v3045_v53 = vor.u32 %v4202_v44, %v3044_v42  ;;  %v2884_v4 = vld [vmem:[#allocation5 + $0xa8] sm:$0xf] }
  0x88   :  { %1822 = vmatpush.bf16.msrb.mxu0 %v3377_v48  ;;  %1835 = vmatpush.bf16.msrb.mxu1 %v3505_v49  ;;  %v4303_v15 = vld [vmem:[#allocation5 + $0x524] sm:$0xf]  ;;  %v3454_v19 = vld [vmem:[#allocation5 + $0x530] sm:$0xf0]  ;;  %v3329_v24 = vor.u32 %v4271_v13, %v3326_v14  ;;  %v3300_v49 = vld [vmem:[#allocation5 + $0x3e8] sm:$0xf] }
  0x89   :  { %1848 = vmatpush.bf16.msrb.mxu2 %v3633_v50  ;;  %v4335_v20 = vld [vmem:[#allocation5 + $0x624] sm:$0xf]  ;;  %v3582_v21 = vld [vmem:[#allocation5 + $0x630] sm:$0xf0]  ;;  %v3457_v27 = vor.u32 %v4303_v15, %v3454_v19  ;;  %v4266_v50 = vld [vmem:[#allocation5 + $0x3f4] sm:$0xf0] }
  0x8a   :  { %1861 = vmatpush.bf16.msrb.mxu3 %v3761_v54  ;;  %v4367_v22 = vld [vmem:[#allocation5 + $0x724] sm:$0xf]  ;;  %v3710_v23 = vld [vmem:[#allocation5 + $0x730] sm:$0xf0]  ;;  %v3585_v28 = vor.u32 %v4335_v20, %v3582_v21  ;;  %v3173_v54 = vor.u32 %v4234_v46, %v3172_v45  ;;  %v3301_v58 = vor.u32 %v4266_v50, %v3300_v49  ;;  %v4162_v5 = vld [vmem:[#allocation5 + $0xb4] sm:$0xf0] }
  0x8b   :  { %v4267_v25 = vld [vmem:[#allocation5 + $0x404] sm:$0xf]  ;;  %v3310_v26 = vld [vmem:[#allocation5 + $0x410] sm:$0xf0]  ;;  %v3713_v32 = vor.u32 %v4367_v22, %v3710_v23  ;;  %v3012_v6 = vld [vmem:[#allocation5 + $0x1a8] sm:$0xf]  ;;  %v2885_v14 = vor.u32 %v4162_v5, %v2884_v4 }
  0x8c   :  { %1823 = vmatpush.bf16.msrb.mxu0 %v3361_v60  ;;  %1836 = vmatpush.bf16.msrb.mxu1 %v3489_v61  ;;  %v4299_v29 = vld [vmem:[#allocation5 + $0x504] sm:$0xf]  ;;  %v3438_v30 = vld [vmem:[#allocation5 + $0x510] sm:$0xf0]  ;;  %v3313_v43 = vor.u32 %v4267_v25, %v3310_v26  ;;  %v3156_v60 = vld [vmem:[#allocation5 + $0x2c8] sm:$0xf] }
  0x8d   :  { %1849 = vmatpush.bf16.msrb.mxu2 %v3617_v62  ;;  %v4331_v31 = vld [vmem:[#allocation5 + $0x604] sm:$0xf]  ;;  %v3566_v33 = vld [vmem:[#allocation5 + $0x610] sm:$0xf0]  ;;  %v3441_v47 = vor.u32 %v4299_v29, %v3438_v30  ;;  %v4230_v61 = vld [vmem:[#allocation5 + $0x2d4] sm:$0xf0] }
  0x8e   :  { %1862 = vmatpush.bf16.msrb.mxu3 %v3745_v3  ;;  %v4363_v35 = vld [vmem:[#allocation5 + $0x704] sm:$0xf]  ;;  %v3694_v36 = vld [vmem:[#allocation5 + $0x710] sm:$0xf0]  ;;  %v3569_v48 = vor.u32 %v4331_v31, %v3566_v33  ;;  %v3284_v62 = vld [vmem:[#allocation5 + $0x3c8] sm:$0xf]  ;;  %v3157_v3 = vor.u32 %v4230_v61, %v3156_v60 }
  0x8f   :  { %v3697_v51 = vor.u32 %v4363_v35, %v3694_v36  ;;  %v3285_v7 = vor.u32 %v4262_v0, %v3284_v62  ;;  %v4194_v8 = vld [vmem:[#allocation5 + $0x1b4] sm:$0xf0]  ;;  %v2868_v19 = vld [vmem:[#allocation5 + $0x88] sm:$0xf] }
  0x90   :  { %1824 = vmatpush.bf16.msrb.mxu0 %v3345_v10  ;;  %1837 = vmatpush.bf16.msrb.mxu1 %v3473_v11  ;;  %v3140_v10 = vld [vmem:[#allocation5 + $0x2a8] sm:$0xf]  ;;  %v4226_v11 = vld [vmem:[#allocation5 + $0x2b4] sm:$0xf0]  ;;  %v3013_v15 = vor.u32 %v4194_v8, %v3012_v6 }
  0x91   :  { %1850 = vmatpush.bf16.msrb.mxu2 %v3601_v12  ;;  %v3268_v12 = vld [vmem:[#allocation5 + $0x3a8] sm:$0xf]  ;;  %v4258_v13 = vld [vmem:[#allocation5 + $0x3b4] sm:$0xf0] }
  0x92   :  { %1863 = vmatpush.bf16.msrb.mxu3 %v3729_v18  ;;  %v3141_v18 = vor.u32 %v4226_v11, %v3140_v10  ;;  %v4158_v20 = vld [vmem:[#allocation5 + $0x94] sm:$0xf0]  ;;  %v2996_v21 = vld [vmem:[#allocation5 + $0x188] sm:$0xf]  ;;  %v3269_v22 = vor.u32 %v4258_v13, %v3268_v12 }
  0x93   :  { %v4190_v23 = vld [vmem:[#allocation5 + $0x194] sm:$0xf0]  ;;  %v3252_v26 = vld [vmem:[#allocation5 + $0x388] sm:$0xf] }
  0x94   :  { %1825 = vmatpush.bf16.msrb.mxu0 %v3329_v24  ;;  %1838 = vmatpush.bf16.msrb.mxu1 %v3457_v27  ;;  %v3124_v24 = vld [vmem:[#allocation5 + $0x288] sm:$0xf]  ;;  %v4222_v25 = vld [vmem:[#allocation5 + $0x294] sm:$0xf0]  ;;  %v2997_v29 = vor.u32 %v4190_v23, %v2996_v21 }
  0x95   :  { %1851 = vmatpush.bf16.msrb.mxu2 %v3585_v28  ;;  %v4254_v27 = vld [vmem:[#allocation5 + $0x394] sm:$0xf0]  ;;  %v2869_v28 = vor.u32 %v4158_v20, %v2868_v19  ;;  %v3125_v30 = vor.u32 %v4222_v25, %v3124_v24  ;;  %v2852_v31 = vld [vmem:[#allocation5 + $0x68] sm:$0xf] }
  0x96   :  { %1864 = vmatpush.bf16.msrb.mxu3 %v3713_v32  ;;  %v4154_v32 = vld [vmem:[#allocation5 + $0x74] sm:$0xf0]  ;;  %v2980_v33 = vld [vmem:[#allocation5 + $0x168] sm:$0xf]  ;;  %v3253_v35 = vor.u32 %v4254_v27, %v3252_v26 }
  0x97   :  { %v4186_v36 = vld [vmem:[#allocation5 + $0x174] sm:$0xf0]  ;;  %v3108_v39 = vld [vmem:[#allocation5 + $0x268] sm:$0xf]  ;;  %v2853_v44 = vor.u32 %v4154_v32, %v2852_v31 }
  0x98   :  { %1826 = vmatpush.bf16.msrb.mxu0 %v3313_v43  ;;  %1839 = vmatpush.bf16.msrb.mxu1 %v3441_v47  ;;  %v4218_v41 = vld [vmem:[#allocation5 + $0x274] sm:$0xf0]  ;;  %v3236_v42 = vld [vmem:[#allocation5 + $0x368] sm:$0xf]  ;;  %v2981_v45 = vor.u32 %v4186_v36, %v2980_v33 }
  0x99   :  { %1852 = vmatpush.bf16.msrb.mxu2 %v3569_v48  ;;  %v4250_v43 = vld [vmem:[#allocation5 + $0x374] sm:$0xf0]  ;;  %v3109_v46 = vor.u32 %v4218_v41, %v3108_v39  ;;  %v2836_v47 = vld [vmem:[#allocation5 + $0x48] sm:$0xf] }
  0x9a   :  { %1865 = vmatpush.bf16.msrb.mxu3 %v3697_v51  ;;  %v4150_v48 = vld [vmem:[#allocation5 + $0x54] sm:$0xf0]  ;;  %v2964_v49 = vld [vmem:[#allocation5 + $0x148] sm:$0xf]  ;;  %v3237_v50 = vor.u32 %v4250_v43, %v3236_v42 }
  0x9b   :  { %1827 = vmatmul.bf16.vlgmr.msrb.gmra.mxu0 %v4726_v37  ;;  %1840 = vmatmul.bf16.vlgmr.msrb.gmra.mxu1 %v4730_v40  ;;  %v4182_v51 = vld [vmem:[#allocation5 + $0x154] sm:$0xf0]  ;;  %v2837_v56 = vor.u32 %v4150_v48, %v2836_v47  ;;  %v2820_v59 = vld [vmem:[#allocation5 + $0x28] sm:$0xf] }
  0x9c   :  { %1871 = vmatpush.bf16.msra.mxu0 %v2917_v52  ;;  %1884 = vmatpush.bf16.msra.mxu1 %v3045_v53  ;;  %v3092_v52 = vld [vmem:[#allocation5 + $0x248] sm:$0xf]  ;;  %v4214_v53 = vld [vmem:[#allocation5 + $0x254] sm:$0xf0]  ;;  %v2965_v57 = vor.u32 %v4182_v51, %v2964_v49 }
  0x9d   :  { %1897 = vmatpush.bf16.msra.mxu2 %v3173_v54  ;;  %1866 = vmatmul.bf16.vlgmr.msrb.gmra.mxu3 %v4728_v38  ;;  %v3220_v54 = vld [vmem:[#allocation5 + $0x348] sm:$0xf]  ;;  %v4246_v55 = vld [vmem:[#allocation5 + $0x354] sm:$0xf0] }
  0x9e   :  { %1910 = vmatpush.bf16.msra.mxu3 %v3301_v58  ;;  %1853 = vmatmul.bf16.vlgmr.msrb.gmra.mxu2 %v4724_v34  ;;  %v3093_v58 = vor.u32 %v4214_v53, %v3092_v52  ;;  %v4146_v60 = vld [vmem:[#allocation5 + $0x34] sm:$0xf0]  ;;  %v2948_v61 = vld [vmem:[#allocation5 + $0x128] sm:$0xf]  ;;  %v3221_v62 = vor.u32 %v4246_v55, %v3220_v54 }
  0x9f   :  { %v4178_v0 = vld [vmem:[#allocation5 + $0x134] sm:$0xf0]  ;;  %v2821_v5 = vor.u32 %v4146_v60, %v2820_v59  ;;  %v2804_v6 = vld [vmem:[#allocation5 + $0x8] sm:$0xf] }
  0xa0   :  { %1872 = vmatpush.bf16.msra.mxu0 %v2901_v1  ;;  %1885 = vmatpush.bf16.msra.mxu1 %v3029_v2  ;;  %v3076_v1 = vld [vmem:[#allocation5 + $0x228] sm:$0xf]  ;;  %v4210_v2 = vld [vmem:[#allocation5 + $0x234] sm:$0xf0]  ;;  %v2949_v8 = vor.u32 %v4178_v0, %v2948_v61 }
  0xa1   :  { %1898 = vmatpush.bf16.msra.mxu2 %v3157_v3  ;;  %v3204_v3 = vld [vmem:[#allocation5 + $0x328] sm:$0xf]  ;;  %v4242_v4 = vld [vmem:[#allocation5 + $0x334] sm:$0xf0]  ;;  %v3077_v10 = vor.u32 %v4210_v2, %v3076_v1 }
  0xa2   :  { %1911 = vmatpush.bf16.msra.mxu3 %v3285_v7  ;;  %v4142_v7 = vld [vmem:[#allocation5 + $0x14] sm:$0xf0]  ;;  %v2932_v11 = vld [vmem:[#allocation5 + $0x108] sm:$0xf] }
  0xa3   :  { %v4174_v12 = vld [vmem:[#allocation5 + $0x114] sm:$0xf0]  ;;  %v3060_v13 = vld [vmem:[#allocation5 + $0x208] sm:$0xf]  ;;  %v2805_v23 = vor.u32 %v4142_v7, %v2804_v6  ;;  %v4748_v7 = vld [vmem:[#allocation7] sm:$0xf] }
  0xa4   :  { %1873 = vmatpush.bf16.msra.mxu0 %v2885_v14  ;;  %1886 = vmatpush.bf16.msra.mxu1 %v3013_v15  ;;  %v3205_v14 = vor.u32 %v4242_v4, %v3204_v3  ;;  %v4206_v15 = vld [vmem:[#allocation5 + $0x214] sm:$0xf0]  ;;  %v3428_v20 = vld [vmem:[#allocation5 + $0x4e8] sm:$0xf]  ;;  %v2933_v27 = vor.u32 %v4174_v12, %v2932_v11 }
  0xa5   :  { %1899 = vmatpush.bf16.msra.mxu2 %v3141_v18  ;;  %v3188_v18 = vld [vmem:[#allocation5 + $0x308] sm:$0xf]  ;;  %v4238_v19 = vld [vmem:[#allocation5 + $0x314] sm:$0xf0] }
  0xa6   :  { %1912 = vmatpush.bf16.msra.mxu3 %v3269_v22  ;;  %v4298_v21 = vld [vmem:[#allocation5 + $0x4f4] sm:$0xf0]  ;;  %v3556_v22 = vld [vmem:[#allocation5 + $0x5e8] sm:$0xf]  ;;  %v3189_v31 = vor.u32 %v4238_v19, %v3188_v18  ;;  %v375_v19 = vperm.slane %v4748_v7, 0 }
  0xa7   :  { %v4330_v24 = vld [vmem:[#allocation5 + $0x5f4] sm:$0xf0]  ;;  %v3684_v25 = vld [vmem:[#allocation5 + $0x6e8] sm:$0xf]  ;;  %v3429_v32 = vor.u32 %v4298_v21, %v3428_v20 }
  0xa8   :  { %1874 = vmatpush.bf16.msra.mxu0 %v2869_v28  ;;  %1887 = vmatpush.bf16.msra.mxu1 %v2997_v29  ;;  %v4362_v26 = vld [vmem:[#allocation5 + $0x6f4] sm:$0xf0]  ;;  %v3061_v28 = vor.u32 %v4206_v15, %v3060_v13  ;;  %v3812_v29 = vld [vmem:[#allocation5 + $0x7e8] sm:$0xf]  ;;  %v3557_v33 = vor.u32 %v4330_v24, %v3556_v22 }
  0xa9   :  { %1900 = vmatpush.bf16.msra.mxu2 %v3125_v30  ;;  %v4394_v30 = vld [vmem:[#allocation5 + $0x7f4] sm:$0xf0]  ;;  %v3412_v36 = vld [vmem:[#allocation5 + $0x4c8] sm:$0xf] }
  0xaa   :  { %1913 = vmatpush.bf16.msra.mxu3 %v3253_v35  ;;  %v3685_v35 = vor.u32 %v4362_v26, %v3684_v25  ;;  %v4294_v39 = vld [vmem:[#allocation5 + $0x4d4] sm:$0xf0]  ;;  %v3540_v41 = vld [vmem:[#allocation5 + $0x5c8] sm:$0xf]  ;;  %v3813_v42 = vor.u32 %v4394_v30, %v3812_v29 }
  0xab   :  { %v4326_v43 = vld [vmem:[#allocation5 + $0x5d4] sm:$0xf0]  ;;  %v3413_v48 = vor.u32 %v4294_v39, %v3412_v36  ;;  %v3396_v51 = vld [vmem:[#allocation5 + $0x4a8] sm:$0xf] }
  0xac   :  { %1875 = vmatpush.bf16.msra.mxu0 %v2853_v44  ;;  %1888 = vmatpush.bf16.msra.mxu1 %v2981_v45  ;;  %v3668_v44 = vld [vmem:[#allocation5 + $0x6c8] sm:$0xf]  ;;  %v4358_v45 = vld [vmem:[#allocation5 + $0x6d4] sm:$0xf0]  ;;  %v3541_v49 = vor.u32 %v4326_v43, %v3540_v41 }
  0xad   :  { %1901 = vmatpush.bf16.msra.mxu2 %v3109_v46  ;;  %v3796_v46 = vld [vmem:[#allocation5 + $0x7c8] sm:$0xf]  ;;  %v4390_v47 = vld [vmem:[#allocation5 + $0x7d4] sm:$0xf0] }
  0xae   :  { %1914 = vmatpush.bf16.msra.mxu3 %v3237_v50  ;;  %v3669_v50 = vor.u32 %v4358_v45, %v3668_v44  ;;  %v4290_v52 = vld [vmem:[#allocation5 + $0x4b4] sm:$0xf0]  ;;  %v3524_v53 = vld [vmem:[#allocation5 + $0x5a8] sm:$0xf]  ;;  %v3797_v54 = vor.u32 %v4390_v47, %v3796_v46 }
  0xaf   :  { %v4322_v55 = vld [vmem:[#allocation5 + $0x5b4] sm:$0xf0]  ;;  %v3397_v60 = vor.u32 %v4290_v52, %v3396_v51  ;;  %v3380_v61 = vld [vmem:[#allocation5 + $0x488] sm:$0xf] }
  0xb0   :  { %1876 = vmatpush.bf16.msra.mxu0 %v2837_v56  ;;  %1889 = vmatpush.bf16.msra.mxu1 %v2965_v57  ;;  %v3652_v56 = vld [vmem:[#allocation5 + $0x6a8] sm:$0xf]  ;;  %v4354_v57 = vld [vmem:[#allocation5 + $0x6b4] sm:$0xf0] }
  0xb1   :  { %1902 = vmatpush.bf16.msra.mxu2 %v3093_v58  ;;  %v3780_v58 = vld [vmem:[#allocation5 + $0x7a8] sm:$0xf]  ;;  %v4386_v59 = vld [vmem:[#allocation5 + $0x7b4] sm:$0xf0]  ;;  %v3653_v0 = vor.u32 %v4354_v57, %v3652_v56 }
  0xb2   :  { %1915 = vmatpush.bf16.msra.mxu3 %v3221_v62  ;;  %v3525_v62 = vor.u32 %v4322_v55, %v3524_v53  ;;  %v4286_v1 = vld [vmem:[#allocation5 + $0x494] sm:$0xf0]  ;;  %v3508_v2 = vld [vmem:[#allocation5 + $0x588] sm:$0xf]  ;;  %v3781_v4 = vor.u32 %v4386_v59, %v3780_v58 }
  0xb3   :  { %v4318_v3 = vld [vmem:[#allocation5 + $0x594] sm:$0xf0]  ;;  %v3381_v11 = vor.u32 %v4286_v1, %v3380_v61  ;;  %v3364_v12 = vld [vmem:[#allocation5 + $0x468] sm:$0xf] }
  0xb4   :  { %1877 = vmatpush.bf16.msra.mxu0 %v2821_v5  ;;  %1890 = vmatpush.bf16.msra.mxu1 %v2949_v8  ;;  %v3636_v5 = vld [vmem:[#allocation5 + $0x688] sm:$0xf]  ;;  %v4350_v6 = vld [vmem:[#allocation5 + $0x694] sm:$0xf0]  ;;  %v3509_v13 = vor.u32 %v4318_v3, %v3508_v2 }
  0xb5   :  { %1903 = vmatpush.bf16.msra.mxu2 %v3077_v10  ;;  %v3764_v8 = vld [vmem:[#allocation5 + $0x788] sm:$0xf]  ;;  %v4382_v10 = vld [vmem:[#allocation5 + $0x794] sm:$0xf0] }
  0xb6   :  { %1916 = vmatpush.bf16.msra.mxu3 %v3205_v14  ;;  %v3637_v14 = vor.u32 %v4350_v6, %v3636_v5  ;;  %v4282_v15 = vld [vmem:[#allocation5 + $0x474] sm:$0xf0]  ;;  %v3492_v18 = vld [vmem:[#allocation5 + $0x568] sm:$0xf]  ;;  %v3765_v20 = vor.u32 %v4382_v10, %v3764_v8 }
  0xb7   :  { %v4314_v21 = vld [vmem:[#allocation5 + $0x574] sm:$0xf0]  ;;  %v3620_v22 = vld [vmem:[#allocation5 + $0x668] sm:$0xf]  ;;  %v3365_v26 = vor.u32 %v4282_v15, %v3364_v12  ;;  %v1685_v44 = vpop.f32.mrf.mxu1  ;;  %v2918_v15 = vld [vmem:[#allocation5 + $0xf8] sm:$0xf0] }
  0xb8   :  { %1878 = vmatpush.bf16.msra.mxu0 %v2805_v23  ;;  %1891 = vmatpush.bf16.msra.mxu1 %v2933_v27  ;;  %v4346_v23 = vld [vmem:[#allocation5 + $0x674] sm:$0xf0]  ;;  %v3748_v24 = vld [vmem:[#allocation5 + $0x768] sm:$0xf] }
  0xb9   :  { %1904 = vmatpush.bf16.msra.mxu2 %v3061_v28  ;;  %v4378_v25 = vld [vmem:[#allocation5 + $0x774] sm:$0xf0]  ;;  %v3493_v28 = vor.u32 %v4314_v21, %v3492_v18  ;;  %v3621_v29 = vor.u32 %v4346_v23, %v3620_v22  ;;  %v3348_v30 = vld [vmem:[#allocation5 + $0x448] sm:$0xf]  ;;  %v4200_v18 = vld [vmem:[#allocation5 + $0x1ec] sm:$0xf] }
  0xba   :  { %1917 = vmatpush.bf16.msra.mxu3 %v3189_v31  ;;  %v4278_v31 = vld [vmem:[#allocation5 + $0x454] sm:$0xf0]  ;;  %v3604_v39 = vld [vmem:[#allocation5 + $0x648] sm:$0xf]  ;;  %v3046_v22 = vld [vmem:[#allocation5 + $0x1f8] sm:$0xf0] }
  0xbb   :  { %1879 = vmatmul.bf16.vlgmr.msra.gmra.mxu0 %v4715_v9  ;;  %1892 = vmatmul.bf16.vlgmr.msra.gmra.mxu1 %v4719_v17  ;;  %v4310_v36 = vld [vmem:[#allocation5 + $0x554] sm:$0xf0]  ;;  %v3349_v46 = vor.u32 %v4278_v31, %v3348_v30  ;;  %v3460_v52 = vld [vmem:[#allocation5 + $0x528] sm:$0xf]  ;;  %v4232_v23 = vld [vmem:[#allocation5 + $0x2ec] sm:$0xf]  ;;  %v3049_v31 = vor.u32 %v4200_v18, %v3046_v22 }
  0xbc   :  { %1923 = vmatpush.bf16.msrb.mxu0 %v3429_v32  ;;  %1936 = vmatpush.bf16.msrb.mxu1 %v3557_v33  ;;  %v3476_v32 = vld [vmem:[#allocation5 + $0x548] sm:$0xf]  ;;  %v4342_v41 = vld [vmem:[#allocation5 + $0x654] sm:$0xf0]  ;;  %v2854_v18 = vld [vmem:[#allocation5 + $0x78] sm:$0xf0] }
  0xbd   :  { %1949 = vmatpush.bf16.msrb.mxu2 %v3685_v35  ;;  %1918 = vmatmul.bf16.vlgmr.msra.gmra.mxu3 %v4717_v16  ;;  %v3749_v35 = vor.u32 %v4378_v25, %v3748_v24  ;;  %v4374_v43 = vld [vmem:[#allocation5 + $0x754] sm:$0xf0]  ;;  %v3588_v55 = vld [vmem:[#allocation5 + $0x628] sm:$0xf]  ;;  %v3174_v24 = vld [vmem:[#allocation5 + $0x2f8] sm:$0xf0] }
  0xbe   :  { %1962 = vmatpush.bf16.msrb.mxu3 %v3813_v42  ;;  %1905 = vmatmul.bf16.vlgmr.msra.gmra.mxu2 %v4712_v63  ;;  %v3732_v42 = vld [vmem:[#allocation5 + $0x748] sm:$0xf]  ;;  %v4274_v51 = vld [vmem:[#allocation5 + $0x434] sm:$0xf0] }
  0xbf   :  { %v3733_v53 = vor.u32 %v4374_v43, %v3732_v42  ;;  %v4338_v56 = vld [vmem:[#allocation5 + $0x634] sm:$0xf0]  ;;  %v3716_v58 = vld [vmem:[#allocation5 + $0x728] sm:$0xf]  ;;  %v3030_v42 = vld [vmem:[#allocation5 + $0x1d8] sm:$0xf0] }
  0xc0   :  { %1924 = vmatpush.bf16.msrb.mxu0 %v3413_v48  ;;  %1937 = vmatpush.bf16.msrb.mxu1 %v3541_v49  ;;  %v3477_v48 = vor.u32 %v4310_v36, %v3476_v32  ;;  %v3605_v49 = vor.u32 %v4342_v41, %v3604_v39  ;;  %v4370_v59 = vld [vmem:[#allocation5 + $0x734] sm:$0xf0]  ;;  %v3444_v5 = vld [vmem:[#allocation5 + $0x508] sm:$0xf]  ;;  %v3177_v32 = vor.u32 %v4232_v23, %v3174_v24  ;;  %v4196_v36 = vld [vmem:[#allocation5 + $0x1cc] sm:$0xf] }
  0xc1   :  { %1950 = vmatpush.bf16.msrb.mxu2 %v3669_v50  ;;  %v3332_v50 = vld [vmem:[#allocation5 + $0x428] sm:$0xf]  ;;  %v4302_v6 = vld [vmem:[#allocation5 + $0x514] sm:$0xf0]  ;;  %v3717_v10 = vor.u32 %v4370_v59, %v3716_v58  ;;  %v4228_v43 = vld [vmem:[#allocation5 + $0x2cc] sm:$0xf] }
  0xc2   :  { %1963 = vmatpush.bf16.msrb.mxu3 %v3797_v54  ;;  %v4306_v54 = vld [vmem:[#allocation5 + $0x534] sm:$0xf0]  ;;  %v3333_v61 = vor.u32 %v4274_v51, %v3332_v50  ;;  %v3572_v8 = vld [vmem:[#allocation5 + $0x608] sm:$0xf]  ;;  %v3445_v25 = vor.u32 %v4302_v6, %v3444_v5  ;;  %v4160_v50 = vld [vmem:[#allocation5 + $0xac] sm:$0xf] }
  0xc3   :  { %v3461_v3 = vor.u32 %v4306_v54, %v3460_v52  ;;  %v3700_v12 = vld [vmem:[#allocation5 + $0x708] sm:$0xf]  ;;  %v2886_v51 = vld [vmem:[#allocation5 + $0xb8] sm:$0xf0]  ;;  %v4192_v52 = vld [vmem:[#allocation5 + $0x1ac] sm:$0xf] }
  0xc4   :  { %1925 = vmatpush.bf16.msrb.mxu0 %v3397_v60  ;;  %1938 = vmatpush.bf16.msrb.mxu1 %v3525_v62  ;;  %v1672_v27 = vpop.f32.mrf.mxu0  ;;  %v1711_v60 = vpop.f32.mrf.mxu3  ;;  %v3316_v62 = vld [vmem:[#allocation5 + $0x408] sm:$0xf]  ;;  %v3014_v54 = vld [vmem:[#allocation5 + $0x1b8] sm:$0xf0]  ;;  %v2889_v59 = vor.u32 %v4160_v50, %v2886_v51  ;;  %v4220_v5 = vld [vmem:[#allocation5 + $0x28c] sm:$0xf] }
  0xc5   :  { %1951 = vmatpush.bf16.msrb.mxu2 %v3653_v0  ;;  %v1673_v33 = vadd.f32 %v1672_v27, %v375_v19  ;;  %v4270_v0 = vld [vmem:[#allocation5 + $0x414] sm:$0xf0]  ;;  %v1687_v19 = vpop.f32.mrf.mxu1  ;;  %v4264_v27 = vld [vmem:[#allocation5 + $0x3ec] sm:$0xf]  ;;  %v3270_v58 = vld [vmem:[#allocation5 + $0x3b8] sm:$0xf0] }
  0xc6   :  { %1964 = vmatpush.bf16.msrb.mxu3 %v3781_v4  ;;  %v1698_v45 = vpop.f32.mrf.mxu2  ;;  %v3589_v4 = vor.u32 %v4338_v56, %v3588_v55  ;;  %v3317_v21 = vor.u32 %v4270_v0, %v3316_v62  ;;  %v4224_v55 = vld [vmem:[#allocation5 + $0x2ac] sm:$0xf]  ;;  %v3142_v56 = vld [vmem:[#allocation5 + $0x2b8] sm:$0xf0] }
  0xc7   :  { %v1686_v47 = vadd.f32 %v1685_v44, %v1673_v33  ;;  %v4164_v33 = vld [vmem:[#allocation5 + $0xcc] sm:$0xf]  ;;  %v3158_v44 = vld [vmem:[#allocation5 + $0x2d8] sm:$0xf0] }
  0xc8   :  { %1926 = vmatpush.bf16.msrb.mxu0 %v3381_v11  ;;  %1939 = vmatpush.bf16.msrb.mxu1 %v3509_v13  ;;  %v4334_v11 = vld [vmem:[#allocation5 + $0x614] sm:$0xf0]  ;;  %v4156_v62 = vld [vmem:[#allocation5 + $0x8c] sm:$0xf]  ;;  %v2870_v0 = vld [vmem:[#allocation5 + $0x98] sm:$0xf0] }
  0xc9   :  { %1952 = vmatpush.bf16.msrb.mxu2 %v3637_v14  ;;  %v1699_v57 = vadd.f32 %v1698_v45, %v1686_v47  ;;  %v4366_v13 = vld [vmem:[#allocation5 + $0x714] sm:$0xf0]  ;;  %v4168_v14 = vld [vmem:[#allocation5 + $0xec] sm:$0xf]  ;;  %v3126_v6 = vld [vmem:[#allocation5 + $0x298] sm:$0xf0] }
  0xca   :  { %1965 = vmatpush.bf16.msrb.mxu3 %v3765_v20  ;;  %v2921_v30 = vor.u32 %v4168_v14, %v2918_v15  ;;  %v4260_v45 = vld [vmem:[#allocation5 + $0x3cc] sm:$0xf]  ;;  %v3129_v14 = vor.u32 %v4220_v5, %v3126_v6  ;;  %v2982_v23 = vld [vmem:[#allocation5 + $0x178] sm:$0xf0] }
  0xcb   :  { %v4751_v1 = vadd.f32 %v1711_v60, %v1699_v57  ;;  %v4256_v57 = vld [vmem:[#allocation5 + $0x3ac] sm:$0xf]  ;;  %v3017_v60 = vor.u32 %v4192_v52, %v3014_v54  ;;  %v2934_v6 = vld [vmem:[#allocation5 + $0x118] sm:$0xf0] }
  0xcc   :  { %1927 = vmatpush.bf16.msrb.mxu0 %v3365_v26  ;;  %1940 = vmatpush.bf16.msrb.mxu1 %v3493_v28  ;;  %v1674_v2 = vpop.f32.mrf.mxu0  ;;  %v3573_v26 = vor.u32 %v4334_v11, %v3572_v8  ;;  %v3302_v28 = vld [vmem:[#allocation5 + $0x3f8] sm:$0xf0]  ;;  %v1713_v39 = vpop.f32.mrf.mxu3  ;;  %v4252_v8 = vld [vmem:[#allocation5 + $0x38c] sm:$0xf]  ;;  %v2873_v11 = vor.u32 %v4156_v62, %v2870_v0 }
  0xcd   :  { %1953 = vmatpush.bf16.msrb.mxu2 %v3621_v29  ;;  %v3701_v29 = vor.u32 %v4366_v13, %v3700_v12  ;;  %v3305_v41 = vor.u32 %v4264_v27, %v3302_v28  ;;  %v4188_v2 = vld [vmem:[#allocation5 + $0x18c] sm:$0xf]  ;;  %v3238_v27 = vld [vmem:[#allocation5 + $0x378] sm:$0xf0] }
  0xce   :  { %1966 = vmatpush.bf16.msrb.mxu3 %v3749_v35  ;;  %v1700_v20 = vpop.f32.mrf.mxu2  ;;  %v2902_v35 = vld [vmem:[#allocation5 + $0xd8] sm:$0xf0]  ;;  %v4152_v15 = vld [vmem:[#allocation5 + $0x6c] sm:$0xf] }
  0xcf   :  { %v2905_v47 = vor.u32 %v4164_v33, %v2902_v35  ;;  %v4184_v19 = vld [vmem:[#allocation5 + $0x16c] sm:$0xf]  ;;  %v2838_v33 = vld [vmem:[#allocation5 + $0x58] sm:$0xf0] }
  0xd0   :  { %1928 = vmatpush.bf16.msrb.mxu0 %v3349_v46  ;;  %1941 = vmatpush.bf16.msrb.mxu1 %v3477_v48  ;;  %v3286_v46 = vld [vmem:[#allocation5 + $0x3d8] sm:$0xf0]  ;;  %v3033_v48 = vor.u32 %v4196_v36, %v3030_v42  ;;  %v4216_v24 = vld [vmem:[#allocation5 + $0x26c] sm:$0xf] }
  0xd1   :  { %1954 = vmatpush.bf16.msrb.mxu2 %v3605_v49  ;;  %v3161_v49 = vor.u32 %v4228_v43, %v3158_v44  ;;  %v4180_v35 = vld [vmem:[#allocation5 + $0x14c] sm:$0xf]  ;;  %v2966_v39 = vld [vmem:[#allocation5 + $0x158] sm:$0xf0] }
  0xd2   :  { %1967 = vmatpush.bf16.msrb.mxu3 %v3733_v53  ;;  %v3289_v53 = vor.u32 %v4260_v45, %v3286_v46  ;;  %v3094_v42 = vld [vmem:[#allocation5 + $0x258] sm:$0xf0]  ;;  %v4244_v45 = vld [vmem:[#allocation5 + $0x34c] sm:$0xf]  ;;  %v2969_v50 = vor.u32 %v4180_v35, %v2966_v39 }
  0xd3   :  { %v3222_v46 = vld [vmem:[#allocation5 + $0x358] sm:$0xf0]  ;;  %v4144_v52 = vld [vmem:[#allocation5 + $0x2c] sm:$0xf] }
  0xd4   :  { %1929 = vmatpush.bf16.msrb.mxu0 %v3333_v61  ;;  %1942 = vmatpush.bf16.msrb.mxu1 %v3461_v3  ;;  %v3145_v61 = vor.u32 %v4224_v55, %v3142_v56  ;;  %v3273_v3 = vor.u32 %v4256_v57, %v3270_v58  ;;  %v4176_v54 = vld [vmem:[#allocation5 + $0x12c] sm:$0xf]  ;;  %v3225_v56 = vor.u32 %v4244_v45, %v3222_v46  ;;  %v2950_v57 = vld [vmem:[#allocation5 + $0x138] sm:$0xf0] }
  0xd5   :  { %1955 = vmatpush.bf16.msrb.mxu2 %v3589_v4  ;;  %v2998_v4 = vld [vmem:[#allocation5 + $0x198] sm:$0xf0]  ;;  %v4208_v58 = vld [vmem:[#allocation5 + $0x22c] sm:$0xf] }
  0xd6   :  { %1968 = vmatpush.bf16.msrb.mxu3 %v3717_v10  ;;  %v3254_v10 = vld [vmem:[#allocation5 + $0x398] sm:$0xf0]  ;;  %v3001_v13 = vor.u32 %v4188_v2, %v2998_v4  ;;  %v4140_v0 = vld [vmem:[#allocation5 + $0xc] sm:$0xf] }
  0xd7   :  { %v3257_v22 = vor.u32 %v4252_v8, %v3254_v10  ;;  %v2806_v2 = vld [vmem:[#allocation5 + $0x18] sm:$0xf0]  ;;  %v4172_v5 = vld [vmem:[#allocation5 + $0x10c] sm:$0xf] }
  0xd8   :  { %1930 = vmatpush.bf16.msrb.mxu0 %v3317_v21  ;;  %1943 = vmatpush.bf16.msrb.mxu1 %v3445_v25  ;;  %v1724_v12 = vpop.f32.mrf.mxu0  ;;  %v1737_v21 = vpop.f32.mrf.mxu1  ;;  %v3110_v25 = vld [vmem:[#allocation5 + $0x278] sm:$0xf0]  ;;  %v4204_v8 = vld [vmem:[#allocation5 + $0x20c] sm:$0xf] }
  0xd9   :  { %1956 = vmatpush.bf16.msrb.mxu2 %v3573_v26  ;;  %v1725_v20 = vadd.f32 %v1724_v12, %v4751_v1  ;;  %v4248_v26 = vld [vmem:[#allocation5 + $0x36c] sm:$0xf]  ;;  %v3062_v12 = vld [vmem:[#allocation5 + $0x218] sm:$0xf0] }
  0xda   :  { %1969 = vmatpush.bf16.msrb.mxu3 %v3701_v29  ;;  %v2857_v29 = vor.u32 %v4152_v15, %v2854_v18  ;;  %v3241_v1 = vor.u32 %v4248_v26, %v3238_v27  ;;  %v4296_v18 = vld [vmem:[#allocation5 + $0x4ec] sm:$0xf]  ;;  %v3065_v26 = vor.u32 %v4204_v8, %v3062_v12  ;;  %v3414_v35 = vld [vmem:[#allocation5 + $0x4d8] sm:$0xf0] }
  0xdb   :  { %1931 = vmatmul.bf16.vlgmr.msrb.gmra.mxu0 %v4726_v37  ;;  %1944 = vmatmul.bf16.vlgmr.msrb.gmra.mxu1 %v4730_v40  ;;  %v1738_v28 = vadd.f32 %v1737_v21, %v1725_v20  ;;  %v4328_v20 = vld [vmem:[#allocation5 + $0x5ec] sm:$0xf]  ;;  %v2809_v21 = vor.u32 %v4140_v0, %v2806_v2  ;;  %v3542_v39 = vld [vmem:[#allocation5 + $0x5d8] sm:$0xf0] }
  0xdc   :  { %1975 = vmatpush.bf16.msra.mxu0 %v2921_v30  ;;  %1988 = vmatpush.bf16.msra.mxu1 %v3049_v31  ;;  %v2985_v30 = vor.u32 %v4184_v19, %v2982_v23  ;;  %v3113_v31 = vor.u32 %v4216_v24, %v3110_v25  ;;  %v3430_v19 = vld [vmem:[#allocation5 + $0x4f8] sm:$0xf0]  ;;  %v4360_v23 = vld [vmem:[#allocation5 + $0x6ec] sm:$0xf]  ;;  %v2937_v25 = vor.u32 %v4172_v5, %v2934_v6 }
  0xdd   :  { %2001 = vmatpush.bf16.msra.mxu2 %v3177_v32  ;;  %1970 = vmatmul.bf16.vlgmr.msrb.gmra.mxu3 %v4728_v38  ;;  %v4148_v32 = vld [vmem:[#allocation5 + $0x4c] sm:$0xf]  ;;  %v3686_v24 = vld [vmem:[#allocation5 + $0x6f8] sm:$0xf0] }
  0xde   :  { %2014 = vmatpush.bf16.msra.mxu3 %v3305_v41  ;;  %1957 = vmatmul.bf16.vlgmr.msrb.gmra.mxu2 %v4724_v34  ;;  %v4212_v41 = vld [vmem:[#allocation5 + $0x24c] sm:$0xf]  ;;  %v3510_v2 = vld [vmem:[#allocation5 + $0x598] sm:$0xf0] }
  0xdf   :  { %v3097_v51 = vor.u32 %v4212_v41, %v3094_v42  ;;  %v4392_v27 = vld [vmem:[#allocation5 + $0x7ec] sm:$0xf]  ;;  %v3670_v42 = vld [vmem:[#allocation5 + $0x6d8] sm:$0xf0] }
  0xe0   :  { %1976 = vmatpush.bf16.msra.mxu0 %v2905_v47  ;;  %1989 = vmatpush.bf16.msra.mxu1 %v3033_v48  ;;  %v1763_v44 = vpop.f32.mrf.mxu3  ;;  %v2841_v47 = vor.u32 %v4148_v32, %v2838_v33  ;;  %v1739_v55 = vpop.f32.mrf.mxu1  ;;  %v3689_v32 = vor.u32 %v4360_v23, %v3686_v24  ;;  %v4292_v33 = vld [vmem:[#allocation5 + $0x4cc] sm:$0xf] }
  0xe1   :  { %2002 = vmatpush.bf16.msra.mxu2 %v3161_v49  ;;  %v1750_v36 = vpop.f32.mrf.mxu2  ;;  %v1726_v49 = vpop.f32.mrf.mxu0  ;;  %v4356_v41 = vld [vmem:[#allocation5 + $0x6cc] sm:$0xf]  ;;  %v3417_v45 = vor.u32 %v4292_v33, %v3414_v35  ;;  %v3654_v55 = vld [vmem:[#allocation5 + $0x6b8] sm:$0xf0] }
  0xe2   :  { %2015 = vmatpush.bf16.msra.mxu3 %v3289_v53  ;;  %v1751_v43 = vadd.f32 %v1750_v36, %v1738_v28  ;;  %v2822_v53 = vld [vmem:[#allocation5 + $0x38] sm:$0xf0]  ;;  %v4324_v36 = vld [vmem:[#allocation5 + $0x5cc] sm:$0xf] }
  0xe3   :  { %v2825_v62 = vor.u32 %v4144_v52, %v2822_v53  ;;  %v3814_v28 = vld [vmem:[#allocation5 + $0x7f8] sm:$0xf0]  ;;  %v3545_v46 = vor.u32 %v4324_v36, %v3542_v39  ;;  %v4288_v49 = vld [vmem:[#allocation5 + $0x4ac] sm:$0xf] }
  0xe4   :  { %1977 = vmatpush.bf16.msra.mxu0 %v2889_v59  ;;  %1990 = vmatpush.bf16.msra.mxu1 %v3017_v60  ;;  %v4758_v48 = vadd.f32 %v1763_v44, %v1751_v43  ;;  %v3078_v59 = vld [vmem:[#allocation5 + $0x238] sm:$0xf0]  ;;  %v4240_v60 = vld [vmem:[#allocation5 + $0x32c] sm:$0xf] }
  0xe5   :  { %2003 = vmatpush.bf16.msra.mxu2 %v3145_v61  ;;  %v3206_v61 = vld [vmem:[#allocation5 + $0x338] sm:$0xf0]  ;;  %v3081_v4 = vor.u32 %v4208_v58, %v3078_v59  ;;  %v4388_v43 = vld [vmem:[#allocation5 + $0x7cc] sm:$0xf] }
  0xe6   :  { %2016 = vmatpush.bf16.msra.mxu3 %v3273_v3  ;;  %v2953_v3 = vor.u32 %v4176_v54, %v2950_v57  ;;  %v3798_v44 = vld [vmem:[#allocation5 + $0x7d8] sm:$0xf0]  ;;  %v4352_v54 = vld [vmem:[#allocation5 + $0x6ac] sm:$0xf]  ;;  %vm2079_vm1 = vcmp.gt.f32.partialorder %v4758_v48, 0.0 }
  0xe7   :  { %v3801_v52 = vor.u32 %v4388_v43, %v3798_v44  ;;  %v3526_v53 = vld [vmem:[#allocation5 + $0x5b8] sm:$0xf0]  ;;  %v4380_v5 = vld [vmem:[#allocation5 + $0x78c] sm:$0xf] }
  0xe8   :  { %1978 = vmatpush.bf16.msra.mxu0 %v2873_v11  ;;  %1991 = vmatpush.bf16.msra.mxu1 %v3001_v13  ;;  %v3209_v11 = vor.u32 %v4240_v60, %v3206_v61  ;;  %v4236_v13 = vld [vmem:[#allocation5 + $0x30c] sm:$0xf]  ;;  %v1765_v15 = vpop.f32.mrf.mxu3  ;;  %v3782_v57 = vld [vmem:[#allocation5 + $0x7b8] sm:$0xf0]  ;;  %v3657_v60 = vor.u32 %v4352_v54, %v3654_v55  ;;  %v376_v54 = vperm.slane %v4748_v7, 1 }
  0xe9   :  { %2004 = vmatpush.bf16.msra.mxu2 %v3129_v14  ;;  %v1752_v10 = vpop.f32.mrf.mxu2  ;;  %v3190_v14 = vld [vmem:[#allocation5 + $0x318] sm:$0xf0]  ;;  %v4284_v61 = vld [vmem:[#allocation5 + $0x48c] sm:$0xf] }
  0xea   :  { %2017 = vmatpush.bf16.msra.mxu3 %v3257_v22  ;;  %v3558_v22 = vld [vmem:[#allocation5 + $0x5f8] sm:$0xf0]  ;;  %v4280_v10 = vld [vmem:[#allocation5 + $0x46c] sm:$0xf] }
  0xeb   :  { %v4312_v12 = vld [vmem:[#allocation5 + $0x56c] sm:$0xf]  ;;  %v3494_v15 = vld [vmem:[#allocation5 + $0x578] sm:$0xf0] }
  0xec   :  { %1979 = vmatpush.bf16.msra.mxu0 %v2857_v29  ;;  %1992 = vmatpush.bf16.msra.mxu1 %v2985_v30  ;;  %v3193_v29 = vor.u32 %v4236_v13, %v3190_v14  ;;  %v3433_v30 = vor.u32 %v4296_v18, %v3430_v19  ;;  %v4344_v18 = vld [vmem:[#allocation5 + $0x66c] sm:$0xf]  ;;  %v3622_v19 = vld [vmem:[#allocation5 + $0x678] sm:$0xf0]  ;;  %v3497_v23 = vor.u32 %v4312_v12, %v3494_v15 }
  0xed   :  { %2005 = vmatpush.bf16.msra.mxu2 %v3113_v31  ;;  %v3561_v31 = vor.u32 %v4328_v20, %v3558_v22  ;;  %v4376_v20 = vld [vmem:[#allocation5 + $0x76c] sm:$0xf]  ;;  %v3625_v24 = vor.u32 %v4344_v18, %v3622_v19  ;;  %v3734_v36 = vld [vmem:[#allocation5 + $0x758] sm:$0xf0] }
  0xee   :  { %2018 = vmatpush.bf16.msra.mxu3 %v3241_v1  ;;  %v3817_v1 = vor.u32 %v4392_v27, %v3814_v28  ;;  %v4308_v27 = vld [vmem:[#allocation5 + $0x54c] sm:$0xf]  ;;  %v3334_v44 = vld [vmem:[#allocation5 + $0x438] sm:$0xf0] }
  0xef   :  { %v4372_v35 = vld [vmem:[#allocation5 + $0x74c] sm:$0xf]  ;;  %v4410_v7 = vld [vmem:[#allocation8 + $0x74] sm:$0xf0] }
  0xf0   :  { %1980 = vmatpush.bf16.msra.mxu0 %v2841_v47  ;;  %1993 = vmatpush.bf16.msra.mxu1 %v2969_v50  ;;  %v3673_v47 = vor.u32 %v4356_v41, %v3670_v42  ;;  %v3398_v50 = vld [vmem:[#allocation5 + $0x4b8] sm:$0xf0]  ;;  %v4272_v43 = vld [vmem:[#allocation5 + $0x42c] sm:$0xf] }
  0xf1   :  { %2006 = vmatpush.bf16.msra.mxu2 %v3097_v51  ;;  %v4320_v51 = vld [vmem:[#allocation5 + $0x5ac] sm:$0xf]  ;;  %v3401_v58 = vor.u32 %v4288_v49, %v3398_v50  ;;  %v3462_v49 = vld [vmem:[#allocation5 + $0x538] sm:$0xf0]  ;;  %v3337_v55 = vor.u32 %v4272_v43, %v3334_v44  ;;  %v3844_v43 = vld [vmem:[#allocation8 + $0x30] sm:$0xf] }
  0xf2   :  { %2019 = vmatpush.bf16.msra.mxu3 %v3225_v56  ;;  %v4384_v56 = vld [vmem:[#allocation5 + $0x7ac] sm:$0xf]  ;;  %v3529_v59 = vor.u32 %v4320_v51, %v3526_v53  ;;  %v3590_v51 = vld [vmem:[#allocation5 + $0x638] sm:$0xf0]  ;;  %v3908_v44 = vld [vmem:[#allocation8 + $0xb0] sm:$0xf] }
  0xf3   :  { %v3785_v0 = vor.u32 %v4384_v56, %v3782_v57  ;;  %v4336_v50 = vld [vmem:[#allocation5 + $0x62c] sm:$0xf]  ;;  %v3718_v53 = vld [vmem:[#allocation5 + $0x738] sm:$0xf0] }
  0xf4   :  { %1981 = vmatpush.bf16.msra.mxu0 %v2825_v62  ;;  %1994 = vmatpush.bf16.msra.mxu1 %v2953_v3  ;;  %v3382_v62 = vld [vmem:[#allocation5 + $0x498] sm:$0xf0]  ;;  %v4348_v3 = vld [vmem:[#allocation5 + $0x68c] sm:$0xf] }
  0xf5   :  { %2007 = vmatpush.bf16.msra.mxu2 %v3081_v4  ;;  %v3638_v4 = vld [vmem:[#allocation5 + $0x698] sm:$0xf0]  ;;  %v4268_v56 = vld [vmem:[#allocation5 + $0x40c] sm:$0xf] }
  0xf6   :  { %2020 = vmatpush.bf16.msra.mxu3 %v3209_v11  ;;  %v3641_v8 = vor.u32 %v4348_v3, %v3638_v4  ;;  %v3366_v11 = vld [vmem:[#allocation5 + $0x478] sm:$0xf0]  ;;  %v4364_v3 = vld [vmem:[#allocation5 + $0x70c] sm:$0xf] }
  0xf7   :  { %v3369_v22 = vor.u32 %v4280_v10, %v3366_v11  ;;  %v4426_v10 = vld [vmem:[#allocation8 + $0xf4] sm:$0xf0] }
  0xf8   :  { %1982 = vmatpush.bf16.msra.mxu0 %v2809_v21  ;;  %1995 = vmatpush.bf16.msra.mxu1 %v2937_v25  ;;  %v4764_v6 = vpop.f32.mrf.mxu0  ;;  %v4766_v13 = vpop.f32.mrf.mxu1  ;;  %v3750_v21 = vld [vmem:[#allocation5 + $0x778] sm:$0xf0]  ;;  %v4276_v25 = vld [vmem:[#allocation5 + $0x44c] sm:$0xf] }
  0xf9   :  { %2008 = vmatpush.bf16.msra.mxu2 %v3065_v26  ;;  %v3350_v26 = vld [vmem:[#allocation5 + $0x458] sm:$0xf0] }
  0xfa   :  { %2021 = vmatpush.bf16.msra.mxu3 %v3193_v29  ;;  %v3753_v29 = vor.u32 %v4376_v20, %v3750_v21  ;;  %v3868_v20 = vld [vmem:[#allocation8 + $0x60] sm:$0xf]  ;;  %v4408_v21 = vld [vmem:[#allocation8 + $0x64] sm:$0xf0] }
  0xfb   :  { %1983 = vmatmul.bf16.vlgmr.msra.gmra.mxu0 %v4715_v9  ;;  %1996 = vmatmul.bf16.vlgmr.msra.gmra.mxu1 %v4719_v17  ;;  %v3766_v9 = vld [vmem:[#allocation5 + $0x798] sm:$0xf0] }
  0xfc   :  { %2027 = vmatpush.bf16.msrb.mxu0 %v3433_v30  ;;  %2040 = vmatpush.bf16.msrb.mxu1 %v3561_v31  ;;  %v3769_v14 = vor.u32 %v4380_v5, %v3766_v9  ;;  %v3478_v30 = vld [vmem:[#allocation5 + $0x558] sm:$0xf0]  ;;  %v4340_v31 = vld [vmem:[#allocation5 + $0x64c] sm:$0xf]  ;;  %v3876_v9 = vld [vmem:[#allocation8 + $0x70] sm:$0xf] }
  0xfd   :  { %2053 = vmatpush.bf16.msrb.mxu2 %v3689_v32  ;;  %2022 = vmatmul.bf16.vlgmr.msra.gmra.mxu3 %v4717_v16  ;;  %v3385_v16 = vor.u32 %v4284_v61, %v3382_v62  ;;  %v3606_v32 = vld [vmem:[#allocation5 + $0x658] sm:$0xf0]  ;;  %v3481_v41 = vor.u32 %v4308_v27, %v3478_v30  ;;  %v3877_v15 = vor.u32 %v4410_v7, %v3876_v9 }
  0xfe   :  { %2066 = vmatpush.bf16.msrb.mxu3 %v3817_v1  ;;  %2009 = vmatmul.bf16.vlgmr.msra.gmra.mxu2 %v4712_v63  ;;  %v4316_v63 = vld [vmem:[#allocation5 + $0x58c] sm:$0xf]  ;;  %v3353_v1 = vor.u32 %v4276_v25, %v3350_v26  ;;  %v3609_v42 = vor.u32 %v4340_v31, %v3606_v32  ;;  %v3446_v61 = vld [vmem:[#allocation5 + $0x518] sm:$0xf0]  ;;  %v3860_v26 = vld [vmem:[#allocation8 + $0x50] sm:$0xf] }
  0xff   :  { %v3513_v17 = vor.u32 %v4316_v63, %v3510_v2  ;;  %v3574_v2 = vld [vmem:[#allocation5 + $0x618] sm:$0xf0] }
 0x100   :  { %2028 = vmatpush.bf16.msrb.mxu0 %v3417_v45  ;;  %2041 = vmatpush.bf16.msrb.mxu1 %v3545_v46  ;;  %v4770_v33 = vpop.f32.mrf.mxu3  ;;  %v1778_v39 = vpop.f32.mrf.mxu0  ;;  %v4304_v45 = vld [vmem:[#allocation5 + $0x52c] sm:$0xf]  ;;  %v3702_v5 = vld [vmem:[#allocation5 + $0x718] sm:$0xf0] }
 0x101   :  { %2054 = vmatpush.bf16.msrb.mxu2 %v3673_v47  ;;  %v4768_v28 = vpop.f32.mrf.mxu2  ;;  %v1791_v46 = vpop.f32.mrf.mxu1  ;;  %v3737_v47 = vor.u32 %v4372_v35, %v3734_v36  ;;  %v3465_v57 = vor.u32 %v4304_v45, %v3462_v49  ;;  %v4406_v27 = vld [vmem:[#allocation8 + $0x54] sm:$0xf0]  ;;  %v4404_v35 = vld [vmem:[#allocation8 + $0x44] sm:$0xf0]  ;;  %v3916_v36 = vld [vmem:[#allocation8 + $0xc0] sm:$0xf] }
 0x102   :  { %2067 = vmatpush.bf16.msrb.mxu3 %v3801_v52  ;;  %v4368_v52 = vld [vmem:[#allocation5 + $0x72c] sm:$0xf]  ;;  %v3861_v30 = vor.u32 %v4406_v27, %v3860_v26  ;;  %v4442_v39 = vld [vmem:[#allocation8 + $0x174] sm:$0xf0]  ;;  %v3972_v26 = vld [vmem:[#allocation8 + $0x130] sm:$0xf] }
 0x103   :  { %v3721_v63 = vor.u32 %v4368_v52, %v3718_v53  ;;  %v4440_v49 = vld [vmem:[#allocation8 + $0x164] sm:$0xf0]  ;;  %v4398_v9 = vld [vmem:[#allocation8 + $0x14] sm:$0xf0] }
 0x104   :  { %2029 = vmatpush.bf16.msrb.mxu0 %v3401_v58  ;;  %2042 = vmatpush.bf16.msrb.mxu1 %v3529_v59  ;;  %v3593_v58 = vor.u32 %v4336_v50, %v3590_v51  ;;  %v3318_v59 = vld [vmem:[#allocation5 + $0x418] sm:$0xf0] }
 0x105   :  { %2055 = vmatpush.bf16.msrb.mxu2 %v3657_v60  ;;  %v4300_v60 = vld [vmem:[#allocation5 + $0x50c] sm:$0xf]  ;;  %v4434_v27 = vld [vmem:[#allocation8 + $0x134] sm:$0xf0] }
 0x106   :  { %2068 = vmatpush.bf16.msrb.mxu3 %v3785_v0  ;;  %v4332_v0 = vld [vmem:[#allocation5 + $0x60c] sm:$0xf]  ;;  %v3449_v11 = vor.u32 %v4300_v60, %v3446_v61  ;;  %v3988_v61 = vld [vmem:[#allocation8 + $0x150] sm:$0xf] }
 0x107   :  { %v3577_v12 = vor.u32 %v4332_v0, %v3574_v2 }
 0x108   :  { %2030 = vmatpush.bf16.msrb.mxu0 %v3385_v16  ;;  %2043 = vmatpush.bf16.msrb.mxu1 %v3513_v17  ;;  %v1817_v4 = vpop.f32.mrf.mxu3  ;;  %v1777_v16 = vadd.f32 %v4764_v6, %v376_v54  ;;  %v3321_v17 = vor.u32 %v4268_v56, %v3318_v59  ;;  %v3869_v6 = vor.u32 %v4408_v21, %v3868_v20  ;;  %v3836_v54 = vld [vmem:[#allocation8 + $0x20] sm:$0xf] }
 0x109   :  { %2056 = vmatpush.bf16.msrb.mxu2 %v3641_v8  ;;  %v1804_v62 = vpop.f32.mrf.mxu2  ;;  %v3940_v8 = vld [vmem:[#allocation8 + $0xf0] sm:$0xf]  ;;  %v3900_v56 = vld [vmem:[#allocation8 + $0xa0] sm:$0xf] }
 0x10a   :  { %2069 = vmatpush.bf16.msrb.mxu3 %v3769_v14  ;;  %v3705_v14 = vor.u32 %v4364_v3, %v3702_v5  ;;  %v3941_v18 = vor.u32 %v4426_v10, %v3940_v8  ;;  %v1790_v19 = vadd.f32 %v4766_v13, %v1777_v16  ;;  %v3924_v13 = vld [vmem:[#allocation8 + $0xd0] sm:$0xf]  ;;  %v4438_v62 = vld [vmem:[#allocation8 + $0x154] sm:$0xf0]  ;;  %v3980_v8 = vld [vmem:[#allocation8 + $0x140] sm:$0xf] }
 0x10b   :  { %v3828_v5 = vld [vmem:[#allocation8 + $0x10] sm:$0xf]  ;;  %v2083_v10 = vmul.f32 0.2, %v4758_v48 }
 0x10c   :  { %2031 = vmatpush.bf16.msrb.mxu0 %v3369_v22  ;;  %2044 = vmatpush.bf16.msrb.mxu1 %v3497_v23  ;;  %v3932_v22 = vld [vmem:[#allocation8 + $0xe0] sm:$0xf]  ;;  %v4424_v23 = vld [vmem:[#allocation8 + $0xe4] sm:$0xf0]  ;;  %v1803_v25 = vadd.f32 %v4768_v28, %v1790_v19  ;;  %v3892_v16 = vld [vmem:[#allocation8 + $0x90] sm:$0xf] }
 0x10d   :  { %2057 = vmatpush.bf16.msrb.mxu2 %v3625_v24  ;;  %v3933_v24 = vor.u32 %v4424_v23, %v3932_v22  ;;  %v4420_v28 = vld [vmem:[#allocation8 + $0xc4] sm:$0xf0]  ;;  %v4409_v23 = vld [vmem:[#allocation8 + $0x74] sm:$0xf] }
 0x10e   :  { %2070 = vmatpush.bf16.msrb.mxu3 %v3753_v29  ;;  %v4422_v29 = vld [vmem:[#allocation8 + $0xd4] sm:$0xf0]  ;;  %v1816_v31 = vadd.f32 %v4770_v33, %v1803_v25  ;;  %v4412_v19 = vld [vmem:[#allocation8 + $0x84] sm:$0xf0] }
 0x10f   :  { %v3925_v32 = vor.u32 %v4422_v29, %v3924_v13  ;;  %v4418_v33 = vld [vmem:[#allocation8 + $0xb4] sm:$0xf0]  ;;  %v4425_v13 = vld [vmem:[#allocation8 + $0xf4] sm:$0xf]  ;;  %v3942_v29 = vld [vmem:[#allocation8 + $0xf8] sm:$0xf0] }
 0x110   :  { %2032 = vmatpush.bf16.msrb.mxu0 %v3353_v1  ;;  %2045 = vmatpush.bf16.msrb.mxu1 %v3481_v41  ;;  %v4004_v1 = vld [vmem:[#allocation8 + $0x170] sm:$0xf]  ;;  %v3909_v53 = vor.u32 %v4418_v33, %v3908_v44  ;;  %v4430_v33 = vld [vmem:[#allocation8 + $0x114] sm:$0xf0] }
 0x111   :  { %2058 = vmatpush.bf16.msrb.mxu2 %v3609_v42  ;;  %v4005_v41 = vor.u32 %v4442_v39, %v4004_v1  ;;  %v3917_v42 = vor.u32 %v4420_v28, %v3916_v36  ;;  %v2087_v36 = vsel %vm2079_vm1, %v4758_v48, %v2083_v10  ;;  %v3945_v28 = vor.u32 %v4425_v13, %v3942_v29  ;;  %v4407_v1 = vld [vmem:[#allocation8 + $0x64] sm:$0xf]  ;;  %v3870_v39 = vld [vmem:[#allocation8 + $0x68] sm:$0xf0]  ;;  %v3830_v13 = vld [vmem:[#allocation8 + $0x18] sm:$0xf0] }
 0x112   :  { %2071 = vmatpush.bf16.msrb.mxu3 %v3737_v47  ;;  %v3996_v47 = vld [vmem:[#allocation8 + $0x160] sm:$0xf]  ;;  %v4786_v44 = vpack.c.bf16 %v2087_v36, %v2087_v36  ;;  %v3998_v10 = vld [vmem:[#allocation8 + $0x168] sm:$0xf0] }
 0x113   :  { %v3997_v51 = vor.u32 %v4440_v49, %v3996_v47  ;;  %v4405_v47 = vld [vmem:[#allocation8 + $0x54] sm:$0xf]  ;;  %v3862_v49 = vld [vmem:[#allocation8 + $0x58] sm:$0xf0] }
 0x114   :  { %2033 = vmatpush.bf16.msrb.mxu0 %v3337_v55  ;;  %2046 = vmatpush.bf16.msrb.mxu1 %v3465_v57  ;;  %v4400_v55 = vld [vmem:[#allocation8 + $0x24] sm:$0xf0] }
 0x115   :  { %2059 = vmatpush.bf16.msrb.mxu2 %v3593_v58  ;;  %v4416_v58 = vld [vmem:[#allocation8 + $0xa4] sm:$0xf0]  ;;  %v3837_v0 = vor.u32 %v4400_v55, %v3836_v54  ;;  %v4441_v55 = vld [vmem:[#allocation8 + $0x174] sm:$0xf] }
 0x116   :  { %2072 = vmatpush.bf16.msrb.mxu3 %v3721_v63  ;;  %v3989_v63 = vor.u32 %v4438_v62, %v3988_v61  ;;  %v3901_v3 = vor.u32 %v4416_v58, %v3900_v56  ;;  %v4428_v54 = vld [vmem:[#allocation8 + $0x104] sm:$0xf0]  ;;  %v4006_v56 = vld [vmem:[#allocation8 + $0x178] sm:$0xf0]  ;;  %v4419_v62 = vld [vmem:[#allocation8 + $0xc4] sm:$0xf] }
 0x118   :  { %2034 = vmatpush.bf16.msrb.mxu0 %v3321_v17  ;;  %2047 = vmatpush.bf16.msrb.mxu1 %v3449_v11  ;;  %v1841_v46 = vpop.f32.mrf.mxu1  ;;  %v4414_v17 = vld [vmem:[#allocation8 + $0x94] sm:$0xf0]  ;;  %v3820_v11 = vld [vmem:[#allocation8] sm:$0xf] }
 0x119   :  { %2060 = vmatpush.bf16.msrb.mxu2 %v3577_v12  ;;  %v4436_v12 = vld [vmem:[#allocation8 + $0x144] sm:$0xf0]  ;;  %v3893_v22 = vor.u32 %v4414_v17, %v3892_v16  ;;  %v3910_v16 = vld [vmem:[#allocation8 + $0xb8] sm:$0xf0] }
 0x11a   :  { %2073 = vmatpush.bf16.msrb.mxu3 %v3705_v14  ;;  %v3829_v14 = vor.u32 %v4398_v9, %v3828_v5  ;;  %v3981_v20 = vor.u32 %v4436_v12, %v3980_v8  ;;  %v3846_v5 = vld [vmem:[#allocation8 + $0x38] sm:$0xf0]  ;;  %v4417_v9 = vld [vmem:[#allocation8 + $0xb4] sm:$0xf]  ;;  %v4439_v8 = vld [vmem:[#allocation8 + $0x164] sm:$0xf] }
 0x11b   :  { %2035 = vmatmul.bf16.vlgmr.msrb.gmra.mxu0 %v4726_v37  ;;  %2048 = vmatmul.bf16.vlgmr.msrb.gmra.mxu1 %v4730_v40  ;;  %v3852_v37 = vld [vmem:[#allocation8 + $0x40] sm:$0xf] }
 0x11c   :  { %2485 = vmatpush.bf16.msra.mxu0 %v3877_v15  ;;  %2498 = vmatpush.bf16.msra.mxu1 %v3941_v18  ;;  %v3853_v40 = vor.u32 %v4404_v35, %v3852_v37  ;;  %v4396_v15 = vld [vmem:[#allocation8 + $0x4] sm:$0xf0]  ;;  %v3884_v18 = vld [vmem:[#allocation8 + $0x80] sm:$0xf] }
 0x11d   :  { %2061 = vmatmul.bf16.vlgmr.msrb.gmra.mxu2 %v4724_v34  ;;  %2074 = vmatmul.bf16.vlgmr.msrb.gmra.mxu3 %v4728_v38  ;;  %v1828_v34 = vpop.f32.mrf.mxu0  ;;  %v4402_v38 = vld [vmem:[#allocation8 + $0x34] sm:$0xf0]  ;;  %v3885_v37 = vor.u32 %v4412_v19, %v3884_v18  ;;  %v3838_v18 = vld [vmem:[#allocation8 + $0x28] sm:$0xf0]  ;;  %v4415_v19 = vld [vmem:[#allocation8 + $0xa4] sm:$0xf] }
 0x11e   :  { %v1829_v45 = vadd.f32 %v1828_v34, %v1816_v31  ;;  %2511 = vmatpush.bf16.msra.mxu2 %v4005_v41  ;;  %v3845_v52 = vor.u32 %v4402_v38, %v3844_v43  ;;  %v3821_v31 = vor.u32 %v4396_v15, %v3820_v11  ;;  %v4423_v41 = vld [vmem:[#allocation8 + $0xe4] sm:$0xf]  ;;  %v3964_v34 = vld [vmem:[#allocation8 + $0x120] sm:$0xf]  ;;  %v4001_v11 = vor.u32 %v4439_v8, %v3998_v10  ;;  %v4052_v8 = vld [vmem:[#allocation8 + $0x1d0] sm:$0xf] }
 0x11f   :  { %v4399_v15 = vld [vmem:[#allocation8 + $0x24] sm:$0xf]  ;;  %v4454_v10 = vld [vmem:[#allocation8 + $0x1d4] sm:$0xf0] }
 0x120   :  { %2486 = vmatpush.bf16.msra.mxu0 %v3869_v6  ;;  %2499 = vmatpush.bf16.msra.mxu1 %v3933_v24  ;;  %v1842_v50 = vadd.f32 %v1841_v46, %v1829_v45  ;;  %v1867_v60 = vpop.f32.mrf.mxu3  ;;  %v1843_v7 = vpop.f32.mrf.mxu1  ;;  %v3878_v6 = vld [vmem:[#allocation8 + $0x78] sm:$0xf0]  ;;  %v3873_v45 = vor.u32 %v4407_v1, %v3870_v39  ;;  %v3956_v46 = vld [vmem:[#allocation8 + $0x110] sm:$0xf] }
 0x121   :  { %v1854_v57 = vpop.f32.mrf.mxu2  ;;  %v3881_v35 = vor.u32 %v4409_v23, %v3878_v6  ;;  %v4437_v23 = vld [vmem:[#allocation8 + $0x154] sm:$0xf]  ;;  %v3990_v6 = vld [vmem:[#allocation8 + $0x158] sm:$0xf0] }
 0x122   :  { %2512 = vmatpush.bf16.msra.mxu2 %v3997_v51  ;;  %v1855_v59 = vadd.f32 %v1854_v57, %v1842_v50  ;;  %v4421_v50 = vld [vmem:[#allocation8 + $0xd4] sm:$0xf]  ;;  %v3957_v51 = vor.u32 %v4430_v33, %v3956_v46  ;;  %v3865_v57 = vor.u32 %v4405_v47, %v3862_v49  ;;  %v3974_v33 = vld [vmem:[#allocation8 + $0x138] sm:$0xf0]  ;;  %v4431_v49 = vld [vmem:[#allocation8 + $0x124] sm:$0xf] }
 0x123   :  { %v4433_v46 = vld [vmem:[#allocation8 + $0x134] sm:$0xf] }
 0x124   :  { %2487 = vmatpush.bf16.msra.mxu0 %v3861_v30  ;;  %2500 = vmatpush.bf16.msra.mxu1 %v3925_v32  ;;  %v1868_v4 = vadd.f32 %v1867_v60, %v1855_v59  ;;  %v3973_v30 = vor.u32 %v4434_v27, %v3972_v26  ;;  %v4403_v59 = vld [vmem:[#allocation8 + $0x44] sm:$0xf]  ;;  %v3854_v60 = vld [vmem:[#allocation8 + $0x48] sm:$0xf0]  ;;  %v4397_v27 = vld [vmem:[#allocation8 + $0x14] sm:$0xf]  ;;  %v3977_v47 = vor.u32 %v4433_v46, %v3974_v33 }
 0x125   :  { %v1830_v2 = vpop.f32.mrf.mxu0  ;;  %v3833_v36 = vor.u32 %v4397_v27, %v3830_v13  ;;  %v4028_v27 = vld [vmem:[#allocation8 + $0x1a0] sm:$0xf]  ;;  %v4448_v13 = vld [vmem:[#allocation8 + $0x1a4] sm:$0xf0] }
 0x126   :  { %2513 = vmatpush.bf16.msra.mxu2 %v3989_v63  ;;  %v2084_v21 = vmul.f32 0.2, %v1868_v4  ;;  %vm2080_vm0 = vcmp.gt.f32.partialorder %v1868_v4, 0.0  ;;  %v3918_v63 = vld [vmem:[#allocation8 + $0xc8] sm:$0xf0]  ;;  %v3857_v2 = vor.u32 %v4403_v59, %v3854_v60 }
 0x127   :  { %v3958_v59 = vld [vmem:[#allocation8 + $0x118] sm:$0xf0] }
 0x128   :  { %2488 = vmatpush.bf16.msra.mxu0 %v3853_v40  ;;  %2501 = vmatpush.bf16.msra.mxu1 %v3917_v42  ;;  %v1869_v25 = vpop.f32.mrf.mxu3  ;;  %v2088_v32 = vsel %vm2080_vm0, %v1868_v4, %v2084_v21  ;;  %v3934_v40 = vld [vmem:[#allocation8 + $0xe8] sm:$0xf0]  ;;  %v4432_v42 = vld [vmem:[#allocation8 + $0x124] sm:$0xf0]  ;;  %v4401_v4 = vld [vmem:[#allocation8 + $0x34] sm:$0xf] }
 0x129   :  { %v1856_v24 = vpop.f32.mrf.mxu2  ;;  %v4784_v43 = vpack.c.bf16 %v2088_v32, %v2088_v32  ;;  %v3965_v38 = vor.u32 %v4432_v42, %v3964_v34  ;;  %v3937_v48 = vor.u32 %v4423_v41, %v3934_v40  ;;  %v3849_v12 = vor.u32 %v4401_v4, %v3846_v5  ;;  %v4395_v40 = vld [vmem:[#allocation8 + $0x4] sm:$0xf]  ;;  %v3822_v34 = vld [vmem:[#allocation8 + $0x8] sm:$0xf0]  ;;  %v4060_v4 = vld [vmem:[#allocation8 + $0x1e0] sm:$0xf] }
 0x12a   :  { %2514 = vmatpush.bf16.msra.mxu2 %v3981_v20  ;;  %v3902_v20 = vld [vmem:[#allocation8 + $0xa8] sm:$0xf0]  ;;  %v3841_v24 = vor.u32 %v4399_v15, %v3838_v18  ;;  %v3993_v25 = vor.u32 %v4437_v23, %v3990_v6  ;;  %v4411_v42 = vld [vmem:[#allocation8 + $0x84] sm:$0xf]  ;;  %v4456_v5 = vld [vmem:[#allocation8 + $0x1e4] sm:$0xf0] }
 0x12b   :  { %v3905_v26 = vor.u32 %v4415_v19, %v3902_v20  ;;  %v4452_v18 = vld [vmem:[#allocation8 + $0x1c4] sm:$0xf0]  ;;  %v4036_v20 = vld [vmem:[#allocation8 + $0x1b0] sm:$0xf] }
 0x12c   :  { %2489 = vmatpush.bf16.msra.mxu0 %v3845_v52  ;;  %2502 = vmatpush.bf16.msra.mxu1 %v3909_v53  ;;  %v3926_v52 = vld [vmem:[#allocation8 + $0xd8] sm:$0xf0]  ;;  %v3948_v53 = vld [vmem:[#allocation8 + $0x100] sm:$0xf] }
 0x12d   :  { %v3929_v58 = vor.u32 %v4421_v50, %v3926_v52  ;;  %v3949_v61 = vor.u32 %v4428_v54, %v3948_v53  ;;  %v3966_v50 = vld [vmem:[#allocation8 + $0x128] sm:$0xf0]  ;;  %v3825_v52 = vor.u32 %v4395_v40, %v3822_v34  ;;  %v4068_v53 = vld [vmem:[#allocation8 + $0x1f0] sm:$0xf]  ;;  %v4457_v40 = vld [vmem:[#allocation8 + $0x1f4] sm:$0xf] }
 0x12e   :  { %2515 = vmatpush.bf16.msra.mxu2 %v3973_v30  ;;  %v4413_v30 = vld [vmem:[#allocation8 + $0x94] sm:$0xf]  ;;  %v4070_v34 = vld [vmem:[#allocation8 + $0x1f8] sm:$0xf0] }
 0x130   :  { %2490 = vmatpush.bf16.msra.mxu0 %v3837_v0  ;;  %2503 = vmatpush.bf16.msra.mxu1 %v3901_v3  ;;  %v4009_v0 = vor.u32 %v4441_v55, %v4006_v56  ;;  %v3921_v3 = vor.u32 %v4419_v62, %v3918_v63  ;;  %v4458_v55 = vld [vmem:[#allocation8 + $0x1f4] sm:$0xf0]  ;;  %v3969_v56 = vor.u32 %v4431_v49, %v3966_v50  ;;  %v4427_v62 = vld [vmem:[#allocation8 + $0x104] sm:$0xf]  ;;  %v3950_v63 = vld [vmem:[#allocation8 + $0x108] sm:$0xf0] }
 0x131   :  { %v4054_v49 = vld [vmem:[#allocation8 + $0x1d8] sm:$0xf0] }
 0x132   :  { %2516 = vmatpush.bf16.msra.mxu2 %v3965_v38  ;;  %v3886_v38 = vld [vmem:[#allocation8 + $0x88] sm:$0xf0] }
 0x133   :  { %v3889_v54 = vor.u32 %v4411_v42, %v3886_v38  ;;  %v4073_v42 = vor.u32 %v4457_v40, %v4070_v34  ;;  %v4455_v38 = vld [vmem:[#allocation8 + $0x1e4] sm:$0xf] }
 0x134   :  { %2491 = vmatpush.bf16.msra.mxu0 %v3829_v14  ;;  %2504 = vmatpush.bf16.msra.mxu1 %v3893_v22  ;;  %v3913_v14 = vor.u32 %v4417_v9, %v3910_v16 }
 0x136   :  { %2517 = vmatpush.bf16.msra.mxu2 %v3957_v51 }
 0x138   :  { %2492 = vmatpush.bf16.msra.mxu0 %v3821_v31  ;;  %2505 = vmatpush.bf16.msra.mxu1 %v3885_v37  ;;  %v1880_v7 = vpop.f32.mrf.mxu0  ;;  %v4790_v17 = vpop.f32.mrf.mxu1  ;;  %v3894_v31 = vld [vmem:[#allocation8 + $0x98] sm:$0xf0]  ;;  %v4435_v37 = vld [vmem:[#allocation8 + $0x144] sm:$0xf] }
 0x139   :  { %v3897_v41 = vor.u32 %v4413_v30, %v3894_v31 }
 0x13a   :  { %2518 = vmatpush.bf16.msra.mxu2 %v3949_v61 }
 0x13b   :  { %2493 = vmatmul.bf16.vlgmr.msra.gmra.mxu0 %v4786_v44  ;;  %2506 = vmatmul.bf16.vlgmr.msra.gmra.mxu1 %v4784_v43 }
 0x13c   :  { %2537 = vmatpush.bf16.msrb.mxu0 %v3881_v35  ;;  %2550 = vmatpush.bf16.msrb.mxu1 %v3945_v28  ;;  %v3982_v35 = vld [vmem:[#allocation8 + $0x148] sm:$0xf0]  ;;  %v4792_v28 = vld [vmem:[#allocation7] sm:$0xf] }
 0x13d   :  { %v377_v1 = vperm.slane %v4792_v28, 2  ;;  %v3985_v39 = vor.u32 %v4435_v37, %v3982_v35  ;;  %v4020_v37 = vld [vmem:[#allocation8 + $0x190] sm:$0xf]  ;;  %v4446_v35 = vld [vmem:[#allocation8 + $0x194] sm:$0xf0] }
 0x13e   :  { %2563 = vmatpush.bf16.msrb.mxu2 %v4009_v0 }
 0x13f   :  { %v1881_v51 = vadd.f32 %v1880_v7, %v377_v1  ;;  %v4061_v7 = vor.u32 %v4456_v5, %v4060_v4  ;;  %v4012_v1 = vld [vmem:[#allocation8 + $0x180] sm:$0xf]  ;;  %v4445_v5 = vld [vmem:[#allocation8 + $0x194] sm:$0xf] }
 0x140   :  { %2538 = vmatpush.bf16.msrb.mxu0 %v3873_v45  ;;  %2551 = vmatpush.bf16.msrb.mxu1 %v3937_v48  ;;  %v1919_v22 = vpop.f32.mrf.mxu3  ;;  %v1882_v29 = vpop.f32.mrf.mxu0 }
 0x141   :  { %v1906_v21 = vpop.f32.mrf.mxu2  ;;  %v1895_v32 = vpop.f32.mrf.mxu1  ;;  %v1894_v60 = vadd.f32 %v4790_v17, %v1881_v51 }
 0x142   :  { %2564 = vmatpush.bf16.msrb.mxu2 %v4001_v11  ;;  %v4053_v11 = vor.u32 %v4454_v10, %v4052_v8  ;;  %v4029_v32 = vor.u32 %v4448_v13, %v4028_v27  ;;  %v4443_v8 = vld [vmem:[#allocation8 + $0x184] sm:$0xf]  ;;  %v4014_v10 = vld [vmem:[#allocation8 + $0x188] sm:$0xf0]  ;;  %v2159_v27 = vld [vmem:[%s4812_s4] sm:$0x3] }
 0x143   :  { %v1907_v0 = vadd.f32 %v1906_v21, %v1894_v60  ;;  %v4450_v21 = vld [vmem:[#allocation8 + $0x1b4] sm:$0xf0]  ;;  %v4038_v60 = vld [vmem:[#allocation8 + $0x1b8] sm:$0xf0]  ;;  %v2161_v13 = vperm.slane %v2159_v27, 0 }
 0x144   :  { %2539 = vmatpush.bf16.msrb.mxu0 %v3865_v57  ;;  %2552 = vmatpush.bf16.msrb.mxu1 %v3929_v58  ;;  %v4069_v57 = vor.u32 %v4458_v55, %v4068_v53  ;;  %v4429_v58 = vld [vmem:[#allocation8 + $0x114] sm:$0xf]  ;;  %v4046_v55 = vld [vmem:[#allocation8 + $0x1c8] sm:$0xf0] }
 0x145   :  { %v3961_v61 = vor.u32 %v4429_v58, %v3958_v59  ;;  %v378_v58 = vperm.slane %v4792_v28, 3  ;;  %v4449_v59 = vld [vmem:[#allocation8 + $0x1b4] sm:$0xf]  ;;  %v4017_v28 = vor.u32 %v4443_v8, %v4014_v10 }
 0x146   :  { %2565 = vmatpush.bf16.msrb.mxu2 %v3993_v25  ;;  %2524 = vmatpush.bf16.msra.mxu3 %v4069_v57  ;;  %v4037_v25 = vor.u32 %v4450_v21, %v4036_v20 }
 0x148   :  { %2540 = vmatpush.bf16.msrb.mxu0 %v3857_v2  ;;  %2553 = vmatpush.bf16.msrb.mxu1 %v3921_v3  ;;  %v1921_v48 = vpop.f32.mrf.mxu3  ;;  %v3953_v2 = vor.u32 %v4427_v62, %v3950_v63  ;;  %v1920_v3 = vadd.f32 %v1919_v22, %v1907_v0  ;;  %v4041_v62 = vor.u32 %v4449_v59, %v4038_v60  ;;  %v4447_v63 = vld [vmem:[#allocation8 + $0x1a4] sm:$0xf]  ;;  %v4030_v0 = vld [vmem:[#allocation8 + $0x1a8] sm:$0xf0]  ;;  %v4470_v59 = vld [vmem:[#allocation10 + $0x58] sm:$0xff] }
 0x149   :  { %v1908_v45 = vpop.f32.mrf.mxu2  ;;  %v4469_v60 = vld [vmem:[#allocation10 + $0x50] sm:$0xff] }
 0x14a   :  { %2566 = vmatpush.bf16.msrb.mxu2 %v3985_v39  ;;  %2525 = vmatpush.bf16.msra.mxu3 %v4061_v7  ;;  %v4444_v39 = vld [vmem:[#allocation8 + $0x184] sm:$0xf0]  ;;  %v4062_v45 = vld [vmem:[#allocation8 + $0x1e8] sm:$0xf0] }
 0x14b   :  { %v4065_v33 = vor.u32 %v4455_v38, %v4062_v45  ;;  %v4466_v38 = vld [vmem:[#allocation10 + $0x38] sm:$0xff] }
 0x14c   :  { %2541 = vmatpush.bf16.msrb.mxu0 %v3849_v12  ;;  %2554 = vmatpush.bf16.msrb.mxu1 %v3913_v14  ;;  %v4474_v45 = vld [vmem:[#allocation10 + $0x78] sm:$0xff] }
 0x14e   :  { %2567 = vmatpush.bf16.msrb.mxu2 %v3977_v47  ;;  %2526 = vmatpush.bf16.msra.mxu3 %v4053_v11  ;;  %v4453_v47 = vld [vmem:[#allocation8 + $0x1d4] sm:$0xf] }
 0x14f   :  { %v4057_v51 = vor.u32 %v4453_v47, %v4054_v49  ;;  %v4463_v49 = vld [vmem:[#allocation10 + $0x20] sm:$0xff] }
 0x150   :  { %2542 = vmatpush.bf16.msrb.mxu0 %v3841_v24  ;;  %2555 = vmatpush.bf16.msrb.mxu1 %v3905_v26 }
 0x152   :  { %2568 = vmatpush.bf16.msrb.mxu2 %v3969_v56 }
 0x154   :  { %2543 = vmatpush.bf16.msrb.mxu0 %v3833_v36  ;;  %2556 = vmatpush.bf16.msrb.mxu1 %v3897_v41  ;;  %v4021_v36 = vor.u32 %v4446_v35, %v4020_v37  ;;  %v4013_v41 = vor.u32 %v4444_v39, %v4012_v1 }
 0x156   :  { %2569 = vmatpush.bf16.msrb.mxu2 %v3961_v61 }
 0x158   :  { %2544 = vmatpush.bf16.msrb.mxu0 %v3825_v52  ;;  %2557 = vmatpush.bf16.msrb.mxu1 %v3889_v54  ;;  %v1932_v9 = vpop.f32.mrf.mxu0  ;;  %v1945_v17 = vpop.f32.mrf.mxu1  ;;  %v4451_v54 = vld [vmem:[#allocation8 + $0x1c4] sm:$0xf] }
 0x159   :  { %v1933_v16 = vadd.f32 %v1932_v9, %v1920_v3  ;;  %v4049_v57 = vor.u32 %v4451_v54, %v4046_v55  ;;  %v4033_v3 = vor.u32 %v4447_v63, %v4030_v0  ;;  %v4022_v9 = vld [vmem:[#allocation8 + $0x198] sm:$0xf0]  ;;  %v4460_v55 = vld [vmem:[#allocation10 + $0x8] sm:$0xff] }
 0x15a   :  { %2570 = vmatpush.bf16.msrb.mxu2 %v3953_v2  ;;  %v4025_v7 = vor.u32 %v4445_v5, %v4022_v9 }
 0x15b   :  { %2545 = vmatmul.bf16.vlgmr.msrb.gmra.mxu0 %v4786_v44  ;;  %2558 = vmatmul.bf16.vlgmr.msrb.gmra.mxu1 %v4784_v43  ;;  %v1946_v44 = vadd.f32 %v1945_v17, %v1933_v16  ;;  %v4044_v43 = vld [vmem:[#allocation8 + $0x1c0] sm:$0xf] }
 0x15c   :  { %v4045_v19 = vor.u32 %v4452_v18, %v4044_v43  ;;  %2729 = vmatpush.bf16.msra.mxu0 %v4466_v38  ;;  %2742 = vmatpush.bf16.msra.mxu1 %v4474_v45 }
 0x15e   :  { %2527 = vmatpush.bf16.msra.mxu3 %v4045_v19 }
 0x160   :  { %v1971_v15 = vpop.f32.mrf.mxu3  ;;  %v1934_v23 = vpop.f32.mrf.mxu0 }
 0x161   :  { %v1958_v12 = vpop.f32.mrf.mxu2  ;;  %v1947_v6 = vpop.f32.mrf.mxu1 }
 0x162   :  { %v1959_v14 = vadd.f32 %v1958_v12, %v1946_v44  ;;  %2528 = vmatpush.bf16.msra.mxu3 %v4037_v25 }
 0x164   :  { %v1972_v22 = vadd.f32 %v1971_v15, %v1959_v14 }
 0x166   :  { %vm2081_vm2 = vcmp.gt.f32.partialorder %v1972_v22, 0.0  ;;  %v2085_v24 = vmul.f32 0.2, %v1972_v22  ;;  %2529 = vmatpush.bf16.msra.mxu3 %v4029_v32 }
 0x168   :  { %v2089_v26 = vsel %vm2081_vm2, %v1972_v22, %v2085_v24  ;;  %v1973_v31 = vpop.f32.mrf.mxu3 }
 0x169   :  { %v2093_v29 = vpack.c.bf16 %v2089_v26, %v2089_v26  ;;  %v1960_v30 = vpop.f32.mrf.mxu2 }
 0x16a   :  { %2530 = vmatpush.bf16.msra.mxu3 %v4021_v36  ;;  %v2162_v36 = vperm.slane %v2159_v27, 1 }
 0x16b   :  { %2519 = vmatmul.bf16.vlgmr.msra.gmra.mxu2 %v2093_v29 }
 0x16e   :  { %2531 = vmatpush.bf16.msra.mxu3 %v4013_v41 }
 0x172   :  { %2576 = vmatpush.bf16.msrb.mxu3 %v4073_v42 }
 0x176   :  { %2577 = vmatpush.bf16.msrb.mxu3 %v4065_v33  ;;  %v4473_v33 = vld [vmem:[#allocation10 + $0x70] sm:$0xff] }
 0x177   :  { %2743 = vmatpush.bf16.msra.mxu1 %v4473_v33 }
 0x178   :  { %v1984_v46 = vpop.f32.mrf.mxu0  ;;  %v1997_v48 = vpop.f32.mrf.mxu1 }
 0x179   :  { %v1985_v4 = vadd.f32 %v1984_v46, %v378_v58  ;;  %v4465_v46 = vld [vmem:[#allocation10 + $0x30] sm:$0xff]  ;;  %v4471_v58 = vld [vmem:[#allocation10 + $0x60] sm:$0xff] }
 0x17a   :  { %2578 = vmatpush.bf16.msrb.mxu3 %v4057_v51  ;;  %2730 = vmatpush.bf16.msra.mxu0 %v4465_v46 }
 0x17b   :  { %2571 = vmatmul.bf16.vlgmr.msrb.gmra.mxu2 %v2093_v29  ;;  %v1998_v16 = vadd.f32 %v1997_v48, %v1985_v4  ;;  %v4464_v48 = vld [vmem:[#allocation10 + $0x28] sm:$0xff] }
 0x17e   :  { %2579 = vmatpush.bf16.msrb.mxu3 %v4049_v57  ;;  %2731 = vmatpush.bf16.msra.mxu0 %v4464_v48  ;;  %v4459_v57 = vld [vmem:[#allocation10] sm:$0xff] }
 0x180   :  { %v2023_v52 = vpop.f32.mrf.mxu3  ;;  %v1986_v53 = vpop.f32.mrf.mxu0 }
 0x181   :  { %v2010_v50 = vpop.f32.mrf.mxu2  ;;  %v1999_v56 = vpop.f32.mrf.mxu1 }
 0x182   :  { %2580 = vmatpush.bf16.msrb.mxu3 %v4041_v62  ;;  %v2011_v17 = vadd.f32 %v2010_v50, %v1998_v16  ;;  %2732 = vmatpush.bf16.msra.mxu0 %v4463_v49  ;;  %v4462_v50 = vld [vmem:[#allocation10 + $0x18] sm:$0xff]  ;;  %v4472_v56 = vld [vmem:[#allocation10 + $0x68] sm:$0xff]  ;;  %v4467_v62 = vld [vmem:[#allocation10 + $0x40] sm:$0xff] }
 0x183   :  { %2744 = vmatpush.bf16.msra.mxu1 %v4472_v56 }
 0x184   :  { %v2024_v11 = vadd.f32 %v2023_v52, %v2011_v17  ;;  %v4461_v52 = vld [vmem:[#allocation10 + $0x10] sm:$0xff] }
 0x186   :  { %2581 = vmatpush.bf16.msrb.mxu3 %v4033_v3  ;;  %2733 = vmatpush.bf16.msra.mxu0 %v4462_v50 }
 0x187   :  { %2745 = vmatpush.bf16.msra.mxu1 %v4471_v58 }
 0x188   :  { %v2025_v2 = vpop.f32.mrf.mxu3 }
 0x189   :  { %v2012_v61 = vpop.f32.mrf.mxu2 }
 0x18a   :  { %2582 = vmatpush.bf16.msrb.mxu3 %v4025_v7  ;;  %2734 = vmatpush.bf16.msra.mxu0 %v4461_v52  ;;  %v4468_v61 = vld [vmem:[#allocation10 + $0x48] sm:$0xff] }
 0x18b   :  { %2746 = vmatpush.bf16.msra.mxu1 %v4470_v59 }
 0x18e   :  { %2583 = vmatpush.bf16.msrb.mxu3 %v4017_v28  ;;  %2735 = vmatpush.bf16.msra.mxu0 %v4460_v55 }
 0x18f   :  { %2747 = vmatpush.bf16.msra.mxu1 %v4469_v60 }
 0x192   :  { %2736 = vmatpush.bf16.msra.mxu0 %v4459_v57 }
 0x193   :  { %2748 = vmatpush.bf16.msra.mxu1 %v4468_v61 }
 0x197   :  { %2749 = vmatpush.bf16.msra.mxu1 %v4467_v62 }
 0x198   :  { %v2036_v44 = vpop.f32.mrf.mxu0  ;;  %v2049_v12 = vpop.f32.mrf.mxu1 }
 0x199   :  { %v2037_v14 = vadd.f32 %v2036_v44, %v2024_v11 }
 0x19b   :  { %v2050_v15 = vadd.f32 %v2049_v12, %v2037_v14  ;;  %v4487_v14 = vld [vmem:[%s4814_s6] ss:$0 sm:$0xff] }
 0x1a0   :  { %v2062_v43 = vpop.f32.mrf.mxu2  ;;  %v2075_v19 = vpop.f32.mrf.mxu3 }
 0x1a1   :  { %v2063_v18 = vadd.f32 %v2062_v43, %v2050_v15  ;;  %v2038_v20 = vpop.f32.mrf.mxu0  ;;  %v2051_v21 = vpop.f32.mrf.mxu1 }
 0x1a3   :  { %v2076_v22 = vadd.f32 %v2075_v19, %v2063_v18 }
 0x1a5   :  { %vm2082_vm3 = vcmp.gt.f32.partialorder %v2076_v22, 0.0  ;;  %v2086_v23 = vmul.f32 0.2, %v2076_v22 }
 0x1a7   :  { %v2090_v6 = vsel %vm2082_vm3, %v2076_v22, %v2086_v23 }
 0x1a8   :  { %v2094_v24 = vpack.c.bf16 %v2090_v6, %v2090_v6  ;;  %v2064_v25 = vpop.f32.mrf.mxu2  ;;  %v2077_v26 = vpop.f32.mrf.mxu3 }
 0x1aa   :  { %2532 = vmatmul.bf16.vlgmr.msra.gmra.mxu3 %v2094_v24 }
 0x1b8   :  { %v2494_v29 = vpop.f32.mrf.mxu0  ;;  %v2507_v31 = vpop.f32.mrf.mxu1 }
 0x1b9   :  { %v2495_v30 = vadd.f32 %v2494_v29, %v2161_v13 }
 0x1ba   :  { %2584 = vmatmul.bf16.vlgmr.msrb.gmra.mxu3 %v2094_v24 }
 0x1bb   :  { %v2508_v32 = vadd.f32 %v2507_v31, %v2495_v30 }
 0x1c0   :  { %v2496_v37 = vpop.f32.mrf.mxu0  ;;  %v2509_v35 = vpop.f32.mrf.mxu1 }
 0x1d8   :  { %v2546_v1 = vpop.f32.mrf.mxu0  ;;  %v2559_v41 = vpop.f32.mrf.mxu1 }
 0x1d9   :  { %v2547_v39 = vadd.f32 %v2546_v1, %v2162_v36 }
 0x1db   :  { %v2560_v40 = vadd.f32 %v2559_v41, %v2547_v39 }
 0x1e0   :  { %v2548_v34 = vpop.f32.mrf.mxu0  ;;  %v2561_v42 = vpop.f32.mrf.mxu1 }
 0x1ee   :  { %v2520_v47 = vpop.f32.mrf.mxu2 }
 0x1ef   :  { %v2521_v63 = vadd.f32 %v2520_v47, %v2508_v32 }
 0x1f6   :  { %v2522_v51 = vpop.f32.mrf.mxu2 }
 0x1fe   :  { %v2572_v53 = vpop.f32.mrf.mxu2 }
 0x1ff   :  { %v2573_v7 = vadd.f32 %v2572_v53, %v2560_v40 }
 0x206   :  { %v2574_v54 = vpop.f32.mrf.mxu2 }
 0x22d   :  { %v2533_v0 = vpop.f32.mrf.mxu3 }
 0x22e   :  { %v2534_v2 = vadd.f32 %v2533_v0, %v2521_v63 }
 0x230   :  { %vm2589_vm4 = vcmp.gt.f32.partialorder %v2534_v2, 0.0  ;;  %v2591_v3 = vmul.f32 0.2, %v2534_v2 }
 0x232   :  { %v2593_v4 = vsel %vm2589_vm4, %v2534_v2, %v2591_v3 }
 0x233   :  { %v2595_v5 = vpack.c.bf16 %v2593_v4, %v2593_v4 }
 0x235   :  { %v2535_v9 = vpop.f32.mrf.mxu3  ;;  %2737 = vmatmul.bf16.vlgmr.msra.gmra.mxu0 %v2595_v5 }
 0x23d   :  { %v2585_v16 = vpop.f32.mrf.mxu3 }
 0x23e   :  { %v2586_v17 = vadd.f32 %v2585_v16, %v2573_v7 }
 0x240   :  { %vm2590_vm5 = vcmp.gt.f32.partialorder %v2586_v17, 0.0  ;;  %v2592_v8 = vmul.f32 0.2, %v2586_v17 }
 0x242   :  { %v2594_v10 = vsel %vm2590_vm5, %v2586_v17, %v2592_v8 }
 0x243   :  { %v2596_v28 = vpack.c.bf16 %v2594_v10, %v2594_v10 }
 0x245   :  { %v2587_v11 = vpop.f32.mrf.mxu3  ;;  %2750 = vmatmul.bf16.vlgmr.msra.gmra.mxu1 %v2596_v28 }
 0x2b2   :  { %v2738_v44 = vpop.f32.mrf.mxu0 }
 0x2b3   :  { %v2739_v15 = vadd.f32 %v4487_v14, %v2738_v44 }
 0x2ba   :  { %v2740_v12 = vpop.f32.mrf.mxu0 }
 0x2c2   :  { %v2751_v43 = vpop.f32.mrf.mxu1 }
 0x2c3   :  { %v2752_v18 = vadd.f32 %v2751_v43, %v2739_v15 }
 0x2c5   :  { %v4138_v19 = vmul.f32 -1.442695, %v2752_v18 }
 0x2c7   :  { %4488 = vpow2.f32 %v4138_v19 }
 0x2ca   :  { %v2753_v20 = vpop.f32.mrf.mxu1 }
 0x2cd   :  { %v4489_v21 = vpop.eup %4488 }
 0x2ce   :  { %v2758_v22 = vadd.f32 1.0, %v4489_v21 }
 0x2d0   :  { %4490 = vrcp.f32 %v2758_v22  ;;  %v2770_v25 = vand.u32 2147483648, %v2758_v22  ;;  %v2768_v27 = vand.u32 2147483647, %v2758_v22  ;;  %vm2764_vm7 = vweird.f32 %v2758_v22 }
 0x2d2   :  { %v2771_v29 = vor.u32 1.1754944e-38, %v2770_v25  ;;  %vm2769_vm9 = vcmp.eq.f32.partialorder %v2768_v27, 8.507059e+37 }
 0x2d6   :  { %v4491_v23 = vpop.eup %4490 }
 0x2d7   :  { %v2760_v6 = vmul.f32 %v4491_v23, %v2758_v22  ;;  %vm2765_vm6 = vweird.f32 %v4491_v23 }
 0x2d8   :  { %vm2766_vm8 = vmor %vm2764_vm7, %vm2765_vm6 }
 0x2d9   :  { %v2761_v24 = vsub.f32 1.0, %v2760_v6 }
 0x2db   :  { %v2762_v26 = vmul.f32 %v4491_v23, %v2761_v24 }
 0x2dd   :  { %v2763_v13 = vadd.f32 %v4491_v23, %v2762_v26 }
 0x2df   :  { %v2767_v30 = vsel %vm2766_vm8, %v4491_v23, %v2763_v13 }
 0x2e0   :  { %v2772_v31 = vsel %vm2769_vm9, %v2771_v29, %v2767_v30 }
 0x2e1   :  { %2774 = vst [vmem:[#allocation11] sm:$0xff] %v2772_v31 }
 0x2e2   :  { %2785 = dma.vmem_to_hbm [thread:$0]  %s2781_s8, 128, %s2783_s10, [#allocation4]  }
 0x2e3   :  { %4643 = dma.done.wait [#allocation4], 128  }
 0x2e4   :  { %4644 = vsyncadd [#allocation4], 4294967168 }
 0x2e5   :  { %2790 = vsyncpa [#allocation3], 1 }
 0x2e6   :  { %2791 = vsyncpa [#allocation6], 1 }
 0x2e7   :  { %2792 = vsyncpa [#allocation9], 1 }
 0x2e8   :  { %2793 = vsyncpa [#allocation4], 1 }

</bundles_post_ra>
